<compile_context>
chip_gen: v7x
topology: tpu7x:2x2x1
jax: 0.10.0
libtpu: 0.0.40
codegen_flags: <defaults>
</compile_context>

<pallas_src>
import functools

import jax
import jax.numpy as jnp
from jax.experimental import pallas as pl
from jax.experimental.pallas import tpu as pltpu

# Window shifts (dy, dx) in im2col row-block order; k = (dy + 1) * 3 + (dx + 1).
_SHIFTS = tuple((dy, dx) for dy in (-1, 0, 1) for dx in (-1, 0, 1))


def _up_conv_kernel(xd_ref, en_ref, wt_ref, bt_ref, wc_ref, bc_ref,
                    wru_ref, wre_ref, br_ref, masks_ref, alpha_ref,
                    o_ref, pad_ref, col_ref, *, w2, halo_l, halo_r):
    """Fused up_conv forward for one batch element.

    xd_ref   : (C, P)      stride-2 zero-dilated decoder plane, P = (2H)*(2W), NCHW flat
    en_ref   : (C, P)      encoder skip plane
    wt_ref   : (C, 9C)     transposed-conv weights, im2col-flattened (bf16)
    bt_ref   : (C, 1)      transposed-conv bias
    wc_ref   : (Cout, 18C) 3x3 conv weights over concat([up, en]), flattened (bf16)
    bc_ref   : (Cout, 1)   3x3 conv bias
    wru_ref  : (Cout, C)   1x1 residual conv weights, up half (bf16)
    wre_ref  : (Cout, C)   1x1 residual conv weights, en half (bf16)
    br_ref   : (Cout, 1)   1x1 residual conv bias
    masks_ref: (8, P)      combined border masks for the 8 non-centre shifts (f32, 0/1)
    alpha_ref: (1,)        PReLU slope (SMEM)
    o_ref    : (Cout, P)   output
    pad_ref  : (C, halo_l + P + halo_r) f32 staging plane with zero halos (scratch)
    col_ref  : (18C, P)    f32 im2col column buffer (scratch)
    """
    c, p = xd_ref.shape
    f32 = jnp.float32
    bf16 = jnp.bfloat16

    # Halo contents are always multiplied by a zero mask downstream, but they must be
    # finite (0 * NaN = NaN), so zero them (cheap, done once per grid step).
    pad_ref[:, :halo_l] = jnp.zeros((c, halo_l), f32)
    pad_ref[:, halo_l + p:] = jnp.zeros((c, halo_r), f32)

    def stage(plane, base):
        """Stage the 9 shifted + masked windows of `plane` into col_ref[base : base+9C)."""
        pad_ref[:, halo_l:halo_l + p] = plane
        row = 0
        for k, (dy, dx) in enumerate(_SHIFTS):
            lo = base + k * c
            if (dy, dx) == (0, 0):
                col_ref[lo:lo + c, :] = plane                 # centre needs no mask / reload
            else:
                start = halo_l + dy * w2 + dx                 # static -> alignment known
                col_ref[lo:lo + c, :] = (pad_ref[:, start:start + p]
                                         * masks_ref[row:row + 1, :])
                row += 1

    # ---- 1) ConvTranspose2d(k=3, s=2, p=1, output_padding=1): ONE (C,9C)@(9C,P) matmul ----
    stage(xd_ref[...], 0)
    up = jnp.dot(wt_ref[...], col_ref[0:9 * c, :].astype(bf16),
                 preferred_element_type=f32) + bt_ref[...]

    # ---- 4a) residual 1x1 conv, up half (ends `up`'s live range before stage 2 peaks) ----
    res = jnp.dot(wru_ref[...], up.astype(bf16), preferred_element_type=f32)

    # ---- 2) 3x3 conv over concat([up, en]): ONE (Cout,18C)@(18C,P) matmul ----
    stage(up, 0)                                              # rows [0, 9C): up windows
    en = en_ref[...]
    res = (res + jnp.dot(wre_ref[...], en.astype(bf16), preferred_element_type=f32)
           + br_ref[...])
    stage(en, 9 * c)                                          # rows [9C, 18C): en windows
    acc = jnp.dot(wc_ref[...], col_ref[...].astype(bf16),
                  preferred_element_type=f32) + bc_ref[...]

    # ---- 3) InstanceNorm2d (single-pass sum/sumsq, biased var, eps=1e-5) + PReLU ----
    inv_p = 1.0 / p
    s1 = jnp.sum(acc, axis=1, keepdims=True)
    s2 = jnp.sum(acc * acc, axis=1, keepdims=True)
    mean = s1 * inv_p
    var = s2 * inv_p - mean * mean
    normed = (acc - mean) * jax.lax.rsqrt(var + 1e-5)
    alpha = alpha_ref[0]
    activated = jnp.where(normed >= 0.0, normed, alpha * normed)

    # ---- 4b) final add ----
    o_ref[...] = (activated + res).astype(o_ref.dtype)


@jax.jit
def up_conv_forward(f_de, f_en, params):
    """f_de: (N, C, H, W); f_en: (N, C, 2H, 2W). Returns (N, Cout, 2H, 2W)."""
    wt, bt = params["wt"], params["bt"]
    wc, bc = params["wc"], params["bc"]
    wr, br = params["wr"], params["br"]
    alpha = params["alpha"]

    n, c, h, w = f_de.shape
    h2, w2 = 2 * h, 2 * w
    p = h2 * w2
    c_out = wc.shape[0]
    assert f_en.shape == (n, c, h2, w2)
    assert wt.shape == (c, c, 3, 3) and wc.shape == (c_out, 2 * c, 3, 3)
    assert wr.shape == (c_out, 2 * c)
    bf16 = jnp.bfloat16

    # Stride-2 zero insertion of the decoder plane.
    # TODO(synk): fold the dilation into the kernel (sub-pixel decomposition).
    xd = jax.lax.pad(f_de, jnp.zeros((), f_de.dtype),
                     ((0, 0, 0), (0, 0, 0), (0, 1, 1), (0, 1, 1))).reshape(n, c, p)
    en = f_en.reshape(n, c, p)

    # im2col-flattened weights in bf16 (tiny re-packs, done once per call).
    #   stage-1 shift (dy,dx) uses wt[:, :, 1-dy, 1-dx]^T ; stage-2 uses wc[..., dy+1, dx+1].
    wt_flat = jnp.concatenate([wt[:, :, 1 - dy, 1 - dx].T for dy, dx in _SHIFTS],
                              axis=1).astype(bf16)                          # (C, 9C)
    wc_flat = jnp.concatenate([wc[:, :c, dy + 1, dx + 1] for dy, dx in _SHIFTS]
                              + [wc[:, c:, dy + 1, dx + 1] for dy, dx in _SHIFTS],
                              axis=1).astype(bf16)                          # (Cout, 18C)
    wru = wr[:, :c].astype(bf16)
    wre = wr[:, c:].astype(bf16)
    btc = bt.reshape(c, 1).astype(jnp.float32)
    bcc = bc.reshape(c_out, 1).astype(jnp.float32)
    brc = br.reshape(c_out, 1).astype(jnp.float32)
    alpha1 = jnp.reshape(alpha, (1,)).astype(jnp.float32)

    # Combined border masks: one mask multiply per staged window (corners pre-combined).
    pos = jnp.arange(p, dtype=jnp.int32)
    yy, xx = pos // w2, pos % w2
    valid = {-1: {"y": yy >= 1, "x": xx >= 1},
             1: {"y": yy <= h2 - 2, "x": xx <= w2 - 2}}
    rows = []
    for dy, dx in _SHIFTS:
        if (dy, dx) == (0, 0):
            continue
        m = jnp.ones((p,), jnp.bool_)
        if dy != 0:
            m = m & valid[dy]["y"]
        if dx != 0:
            m = m & valid[dx]["x"]
        rows.append(m)
    masks = jnp.stack(rows, axis=0).astype(jnp.float32)                     # (8, P)

    halo_r = w2 + 1
    halo_l = ((w2 + 1 + 127) // 128) * 128        # centre plane starts on a lane boundary

    # VMEM budget derived from shapes + headroom (do not request the whole chip's VMEM).
    io_bytes = 2 * (2 * c * p + c_out * p) * 4                  # double-buffered xd/en/out
    const_bytes = 2 * ((9 * c * c + 18 * c * c_out + 2 * c * c_out) * 2
                       + (c + 2 * c_out + 8 * p) * 4 + 4)
    scratch_bytes = (c * (halo_l + p + halo_r) + 18 * c * p) * 4            # pad + col
    temp_bytes = (2 * c + 4 * c_out) * p * 4                    # up/en/acc/normed/res temps
    need = io_bytes + const_bytes + scratch_bytes + temp_bytes
    # Cap below v7x's 64 MiB physical VMEM; v5e/v6e (128 MiB) could raise the cap for large
    # planes, but those sizes also want the row-band tiling TODO instead of bigger blocks.
    vmem_limit = int(min(max(2 * need + (4 << 20), 32 << 20), 56 << 20))

    kernel = functools.partial(_up_conv_kernel, w2=w2, halo_l=halo_l, halo_r=halo_r)

    out = pl.pallas_call(
        kernel,
        out_shape=jax.ShapeDtypeStruct((n, c_out, p), f_de.dtype),
        grid_spec=pltpu.PrefetchScalarGridSpec(
            num_scalar_prefetch=0,
            grid=(n,),
            in_specs=[
                pl.BlockSpec((None, c, p), lambda i: (i, 0, 0)),            # xd
                pl.BlockSpec((None, c, p), lambda i: (i, 0, 0)),            # en
                pl.BlockSpec((c, 9 * c), lambda i: (0, 0)),                 # wt_flat
                pl.BlockSpec((c, 1), lambda i: (0, 0)),                     # bt
                pl.BlockSpec((c_out, 18 * c), lambda i: (0, 0)),            # wc_flat
                pl.BlockSpec((c_out, 1), lambda i: (0, 0)),                 # bc
                pl.BlockSpec((c_out, c), lambda i: (0, 0)),                 # wru
                pl.BlockSpec((c_out, c), lambda i: (0, 0)),                 # wre
                pl.BlockSpec((c_out, 1), lambda i: (0, 0)),                 # br
                pl.BlockSpec((8, p), lambda i: (0, 0)),                     # masks
                pl.BlockSpec(memory_space=pltpu.MemorySpace.SMEM),          # alpha
            ],
            out_specs=pl.BlockSpec((None, c_out, p), lambda i: (i, 0, 0)),
            scratch_shapes=[
                pltpu.VMEM((c, halo_l + p + halo_r), jnp.float32),          # pad_ref
                pltpu.VMEM((18 * c, p), jnp.float32),                       # col_ref
            ],
        ),
        compiler_params=pltpu.CompilerParams(
            dimension_semantics=("parallel",),
            vmem_limit_bytes=vmem_limit,
        ),
    )(xd, en, wt_flat, btc, wc_flat, bcc, wru, wre, brc, masks, alpha1)

    return out.reshape(n, c_out, h2, w2)


def init_params(key, in_ch, out_ch):
    """Deterministic init matching the PyTorch layer shapes."""
    k = jax.random.split(key, 6)
    c2 = 2 * in_ch
    bt_bound = 1.0 / jnp.sqrt(in_ch * 9.0)
    wt = jax.random.uniform(k[0], (in_ch, in_ch, 3, 3), jnp.float32, -bt_bound, bt_bound)
    bt = jax.random.uniform(k[1], (in_ch,), jnp.float32, -bt_bound, bt_bound)
    bc_bound = 1.0 / jnp.sqrt(c2 * 9.0)
    wc = jax.random.uniform(k[2], (out_ch, c2, 3, 3), jnp.float32, -bc_bound, bc_bound)
    bc = jax.random.uniform(k[3], (out_ch,), jnp.float32, -bc_bound, bc_bound)
    br_bound = 1.0 / jnp.sqrt(float(c2))
    wr = jax.random.uniform(k[4], (out_ch, c2), jnp.float32, -br_bound, br_bound)
    br = jax.random.uniform(k[5], (out_ch,), jnp.float32, -br_bound, br_bound)
    alpha = jnp.float32(0.25)   # nn.PReLU() default init
    return dict(wt=wt, bt=bt, wc=wc, bc=bc, alpha=alpha, wr=wr, br=br)


def up_conv_reference(f_de, f_en, params):
    """Pure-JAX f32 reference written directly from the PyTorch definitions."""
    wt, bt = params["wt"], params["bt"]
    wc, bc = params["wc"], params["bc"]
    wr, br = params["wr"], params["br"]
    alpha = params["alpha"]
    n, c, h, w = f_de.shape
    h2, w2 = 2 * h, 2 * w
    # ConvTranspose2d(k=3, s=2, p=1, output_padding=1): scatter form of the definition.
    full = jnp.zeros((n, c, 2 * h + 1, 2 * w + 1), jnp.float32)
    for ky in range(3):
        for kx in range(3):
            contrib = jnp.einsum("nchw,co->nohw", f_de, wt[:, :, ky, kx])
            full = full.at[:, :, ky:ky + 2 * h:2, kx:kx + 2 * w:2].add(contrib)
    up = full[:, :, 1:1 + h2, 1:1 + w2] + bt[None, :, None, None]
    cat = jnp.concatenate([up, f_en], axis=1)
    conv = jax.lax.conv_general_dilated(
        cat, wc, window_strides=(1, 1), padding=((1, 1), (1, 1)),
        dimension_numbers=("NCHW", "OIHW", "NCHW"))
    conv = conv + bc[None, :, None, None]
    mean = jnp.mean(conv, axis=(2, 3), keepdims=True)
    var = jnp.mean((conv - mean) ** 2, axis=(2, 3), keepdims=True)
    normed = (conv - mean) / jnp.sqrt(var + 1e-5)
    act = jnp.where(normed >= 0, normed, alpha * normed)
    res = jnp.einsum("nchw,oc->nohw", cat, wr) + br[None, :, None, None]
    return act + res


if __name__ == "__main__":
    key = jax.random.PRNGKey(0)
    k_de, k_en, k_p = jax.random.split(key, 3)

    n, in_ch, out_ch = 2, 8, 8
    h = w = 8                                     # decoder feature; skip is 16x16
    f_de = jax.random.normal(k_de, (n, in_ch, h, w), jnp.float32)
    f_en = jax.random.normal(k_en, (n, in_ch, 2 * h, 2 * w), jnp.float32)
    params = init_params(k_p, in_ch, out_ch)

    y = up_conv_forward(f_de, f_en, params)
    y = jax.block_until_ready(y)

    ref = up_conv_reference(f_de, f_en, params)
    assert y.shape == (n, out_ch, 2 * h, 2 * w), y.shape
    err = jnp.abs(y - ref)
    max_err = float(jnp.max(err))
    mean_err = float(jnp.mean(err))
    # bf16 MXU operands with f32 accumulation: expected max |err| ~ 1e-2 on O(1) outputs
    # (InstanceNorm rescales to unit variance).  Structural bugs (wrong tap / mask / weight
    # ordering) give O(1) errors, so these bounds still catch them with a wide margin.
    assert max_err < 6e-2, ("max_err", max_err)
    assert mean_err < 8e-3, ("mean_err", mean_err)

    print("KERNEL_OK")
</pallas_src>

<mosaic_0001>
module attributes {stable_mosaic.version = 11 : i64} {
  func.func @_up_conv_kernel(%arg0: i32, %arg1: memref<1x8x256xf32, #tpu.memory_space<vmem>>, %arg2: memref<1x8x256xf32, #tpu.memory_space<vmem>>, %arg3: memref<8x72xbf16, #tpu.memory_space<vmem>>, %arg4: memref<8x1xf32, #tpu.memory_space<vmem>>, %arg5: memref<8x144xbf16, #tpu.memory_space<vmem>>, %arg6: memref<8x1xf32, #tpu.memory_space<vmem>>, %arg7: memref<8x8xbf16, #tpu.memory_space<vmem>>, %arg8: memref<8x8xbf16, #tpu.memory_space<vmem>>, %arg9: memref<8x1xf32, #tpu.memory_space<vmem>>, %arg10: memref<8x256xf32, #tpu.memory_space<vmem>>, %arg11: memref<1xf32, #tpu.memory_space<smem>>, %arg12: memref<1x8x256xf32, #tpu.memory_space<vmem>>, %arg13: memref<8x401xf32, #tpu.memory_space<vmem>>, %arg14: memref<144x256xf32, #tpu.memory_space<vmem>>) attributes {dimension_semantics = [#tpu.dimension_semantics<parallel>], iteration_bounds = array<i64: 2>, scalar_prefetch = 0 : i64, scratch_operands = 2 : i64, tpu.core_type = #tpu.core_type<tc>, window_params = [{transform_indices = @transform_0, window_bounds = array<i64: 1, 8, 256>}, {transform_indices = @transform_1, window_bounds = array<i64: 1, 8, 256>}, {pipeline_mode = #tpu.pipeline_mode<synchronous>, transform_indices = @transform_2, window_bounds = array<i64: 8, 72>}, {pipeline_mode = #tpu.pipeline_mode<synchronous>, transform_indices = @transform_3, window_bounds = array<i64: 8, 1>}, {pipeline_mode = #tpu.pipeline_mode<synchronous>, transform_indices = @transform_4, window_bounds = array<i64: 8, 144>}, {pipeline_mode = #tpu.pipeline_mode<synchronous>, transform_indices = @transform_5, window_bounds = array<i64: 8, 1>}, {pipeline_mode = #tpu.pipeline_mode<synchronous>, transform_indices = @transform_6, window_bounds = array<i64: 8, 8>}, {pipeline_mode = #tpu.pipeline_mode<synchronous>, transform_indices = @transform_7, window_bounds = array<i64: 8, 8>}, {pipeline_mode = #tpu.pipeline_mode<synchronous>, transform_indices = @transform_8, window_bounds = array<i64: 8, 1>}, {pipeline_mode = #tpu.pipeline_mode<synchronous>, transform_indices = @transform_9, window_bounds = array<i64: 8, 256>}, {transform_indices = @transform_10, window_bounds = array<i64: 1>}, {transform_indices = @transform_11, window_bounds = array<i64: 1, 8, 256>}]} {
    %cst = arith.constant 0.000000e+00 : f32
    %0 = vector.broadcast %cst : f32 to vector<8x128xf32>
    %c0 = arith.constant 0 : index
    %c0_0 = arith.constant 0 : index
    %1 = vector.load %arg13[%c0, %c0_0] : memref<8x401xf32, #tpu.memory_space<vmem>>, vector<8x128xf32>
    tpu.vector_store %arg13[%c0, %c0_0], %0 {strides = array<i32>} : memref<8x401xf32, #tpu.memory_space<vmem>>, vector<8x128xf32>,
    %cst_1 = arith.constant 0.000000e+00 : f32
    %2 = vector.broadcast %cst_1 : f32 to vector<8x17xf32>
    %c0_2 = arith.constant 0 : index
    %c384 = arith.constant 384 : index
    %3 = vector.load %arg13[%c0_2, %c384] : memref<8x401xf32, #tpu.memory_space<vmem>>, vector<8x17xf32>
    tpu.vector_store %arg13[%c0_2, %c384], %2 {strides = array<i32>} : memref<8x401xf32, #tpu.memory_space<vmem>>, vector<8x17xf32>,
    %c0_3 = arith.constant 0 : index
    %c0_4 = arith.constant 0 : index
    %c0_5 = arith.constant 0 : index
    %4 = vector.load %arg1[%c0_3, %c0_4, %c0_5] : memref<1x8x256xf32, #tpu.memory_space<vmem>>, vector<1x8x256xf32>
    %5 = vector.shape_cast %4 : vector<1x8x256xf32> to vector<8x256xf32>
    %c0_6 = arith.constant 0 : index
    %c128 = arith.constant 128 : index
    %6 = vector.load %arg13[%c0_6, %c128] : memref<8x401xf32, #tpu.memory_space<vmem>>, vector<8x256xf32>
    tpu.vector_store %arg13[%c0_6, %c128], %5 {strides = array<i32>} : memref<8x401xf32, #tpu.memory_space<vmem>>, vector<8x256xf32>,
    %c0_7 = arith.constant 0 : index
    %c111 = arith.constant 111 : index
    %7 = vector.load %arg13[%c0_7, %c111] : memref<8x401xf32, #tpu.memory_space<vmem>>, vector<8x256xf32>
    %c0_8 = arith.constant 0 : index
    %c0_9 = arith.constant 0 : index
    %8 = vector.load %arg10[%c0_8, %c0_9] : memref<8x256xf32, #tpu.memory_space<vmem>>, vector<1x256xf32>
    %9 = vector.broadcast %8 : vector<1x256xf32> to vector<8x256xf32>
    %10 = arith.mulf %7, %9 : vector<8x256xf32>
    %c0_10 = arith.constant 0 : index
    %c0_11 = arith.constant 0 : index
    %11 = vector.load %arg14[%c0_10, %c0_11] : memref<144x256xf32, #tpu.memory_space<vmem>>, vector<8x256xf32>
    tpu.vector_store %arg14[%c0_10, %c0_11], %10 {strides = array<i32>} : memref<144x256xf32, #tpu.memory_space<vmem>>, vector<8x256xf32>,
    %c0_12 = arith.constant 0 : index
    %c112 = arith.constant 112 : index
    %12 = vector.load %arg13[%c0_12, %c112] : memref<8x401xf32, #tpu.memory_space<vmem>>, vector<8x256xf32>
    %c1 = arith.constant 1 : index
    %c0_13 = arith.constant 0 : index
    %13 = vector.load %arg10[%c1, %c0_13] : memref<8x256xf32, #tpu.memory_space<vmem>>, vector<1x256xf32>
    %14 = vector.broadcast %13 : vector<1x256xf32> to vector<8x256xf32>
    %15 = arith.mulf %12, %14 : vector<8x256xf32>
    %c8 = arith.constant 8 : index
    %c0_14 = arith.constant 0 : index
    %16 = vector.load %arg14[%c8, %c0_14] : memref<144x256xf32, #tpu.memory_space<vmem>>, vector<8x256xf32>
    tpu.vector_store %arg14[%c8, %c0_14], %15 {strides = array<i32>} : memref<144x256xf32, #tpu.memory_space<vmem>>, vector<8x256xf32>,
    %c0_15 = arith.constant 0 : index
    %c113 = arith.constant 113 : index
    %17 = vector.load %arg13[%c0_15, %c113] : memref<8x401xf32, #tpu.memory_space<vmem>>, vector<8x256xf32>
    %c2 = arith.constant 2 : index
    %c0_16 = arith.constant 0 : index
    %18 = vector.load %arg10[%c2, %c0_16] : memref<8x256xf32, #tpu.memory_space<vmem>>, vector<1x256xf32>
    %19 = vector.broadcast %18 : vector<1x256xf32> to vector<8x256xf32>
    %20 = arith.mulf %17, %19 : vector<8x256xf32>
    %c16 = arith.constant 16 : index
    %c0_17 = arith.constant 0 : index
    %21 = vector.load %arg14[%c16, %c0_17] : memref<144x256xf32, #tpu.memory_space<vmem>>, vector<8x256xf32>
    tpu.vector_store %arg14[%c16, %c0_17], %20 {strides = array<i32>} : memref<144x256xf32, #tpu.memory_space<vmem>>, vector<8x256xf32>,
    %c0_18 = arith.constant 0 : index
    %c127 = arith.constant 127 : index
    %22 = vector.load %arg13[%c0_18, %c127] : memref<8x401xf32, #tpu.memory_space<vmem>>, vector<8x256xf32>
    %c3 = arith.constant 3 : index
    %c0_19 = arith.constant 0 : index
    %23 = vector.load %arg10[%c3, %c0_19] : memref<8x256xf32, #tpu.memory_space<vmem>>, vector<1x256xf32>
    %24 = vector.broadcast %23 : vector<1x256xf32> to vector<8x256xf32>
    %25 = arith.mulf %22, %24 : vector<8x256xf32>
    %c24 = arith.constant 24 : index
    %c0_20 = arith.constant 0 : index
    %26 = vector.load %arg14[%c24, %c0_20] : memref<144x256xf32, #tpu.memory_space<vmem>>, vector<8x256xf32>
    tpu.vector_store %arg14[%c24, %c0_20], %25 {strides = array<i32>} : memref<144x256xf32, #tpu.memory_space<vmem>>, vector<8x256xf32>,
    %c32 = arith.constant 32 : index
    %c0_21 = arith.constant 0 : index
    %27 = vector.load %arg14[%c32, %c0_21] : memref<144x256xf32, #tpu.memory_space<vmem>>, vector<8x256xf32>
    tpu.vector_store %arg14[%c32, %c0_21], %5 {strides = array<i32>} : memref<144x256xf32, #tpu.memory_space<vmem>>, vector<8x256xf32>,
    %c0_22 = arith.constant 0 : index
    %c129 = arith.constant 129 : index
    %28 = vector.load %arg13[%c0_22, %c129] : memref<8x401xf32, #tpu.memory_space<vmem>>, vector<8x256xf32>
    %c4 = arith.constant 4 : index
    %c0_23 = arith.constant 0 : index
    %29 = vector.load %arg10[%c4, %c0_23] : memref<8x256xf32, #tpu.memory_space<vmem>>, vector<1x256xf32>
    %30 = vector.broadcast %29 : vector<1x256xf32> to vector<8x256xf32>
    %31 = arith.mulf %28, %30 : vector<8x256xf32>
    %c40 = arith.constant 40 : index
    %c0_24 = arith.constant 0 : index
    %32 = vector.load %arg14[%c40, %c0_24] : memref<144x256xf32, #tpu.memory_space<vmem>>, vector<8x256xf32>
    tpu.vector_store %arg14[%c40, %c0_24], %31 {strides = array<i32>} : memref<144x256xf32, #tpu.memory_space<vmem>>, vector<8x256xf32>,
    %c0_25 = arith.constant 0 : index
    %c143 = arith.constant 143 : index
    %33 = vector.load %arg13[%c0_25, %c143] : memref<8x401xf32, #tpu.memory_space<vmem>>, vector<8x256xf32>
    %c5 = arith.constant 5 : index
    %c0_26 = arith.constant 0 : index
    %34 = vector.load %arg10[%c5, %c0_26] : memref<8x256xf32, #tpu.memory_space<vmem>>, vector<1x256xf32>
    %35 = vector.broadcast %34 : vector<1x256xf32> to vector<8x256xf32>
    %36 = arith.mulf %33, %35 : vector<8x256xf32>
    %c48 = arith.constant 48 : index
    %c0_27 = arith.constant 0 : index
    %37 = vector.load %arg14[%c48, %c0_27] : memref<144x256xf32, #tpu.memory_space<vmem>>, vector<8x256xf32>
    tpu.vector_store %arg14[%c48, %c0_27], %36 {strides = array<i32>} : memref<144x256xf32, #tpu.memory_space<vmem>>, vector<8x256xf32>,
    %c0_28 = arith.constant 0 : index
    %c144 = arith.constant 144 : index
    %38 = vector.load %arg13[%c0_28, %c144] : memref<8x401xf32, #tpu.memory_space<vmem>>, vector<8x256xf32>
    %c6 = arith.constant 6 : index
    %c0_29 = arith.constant 0 : index
    %39 = vector.load %arg10[%c6, %c0_29] : memref<8x256xf32, #tpu.memory_space<vmem>>, vector<1x256xf32>
    %40 = vector.broadcast %39 : vector<1x256xf32> to vector<8x256xf32>
    %41 = arith.mulf %38, %40 : vector<8x256xf32>
    %c56 = arith.constant 56 : index
    %c0_30 = arith.constant 0 : index
    %42 = vector.load %arg14[%c56, %c0_30] : memref<144x256xf32, #tpu.memory_space<vmem>>, vector<8x256xf32>
    tpu.vector_store %arg14[%c56, %c0_30], %41 {strides = array<i32>} : memref<144x256xf32, #tpu.memory_space<vmem>>, vector<8x256xf32>,
    %c0_31 = arith.constant 0 : index
    %c145 = arith.constant 145 : index
    %43 = vector.load %arg13[%c0_31, %c145] : memref<8x401xf32, #tpu.memory_space<vmem>>, vector<8x256xf32>
    %c7 = arith.constant 7 : index
    %c0_32 = arith.constant 0 : index
    %44 = vector.load %arg10[%c7, %c0_32] : memref<8x256xf32, #tpu.memory_space<vmem>>, vector<1x256xf32>
    %45 = vector.broadcast %44 : vector<1x256xf32> to vector<8x256xf32>
    %46 = arith.mulf %43, %45 : vector<8x256xf32>
    %c64 = arith.constant 64 : index
    %c0_33 = arith.constant 0 : index
    %47 = vector.load %arg14[%c64, %c0_33] : memref<144x256xf32, #tpu.memory_space<vmem>>, vector<8x256xf32>
    tpu.vector_store %arg14[%c64, %c0_33], %46 {strides = array<i32>} : memref<144x256xf32, #tpu.memory_space<vmem>>, vector<8x256xf32>,
    %c0_34 = arith.constant 0 : index
    %c0_35 = arith.constant 0 : index
    %48 = vector.load %arg3[%c0_34, %c0_35] : memref<8x72xbf16, #tpu.memory_space<vmem>>, vector<8x72xbf16>
    %c0_36 = arith.constant 0 : index
    %c0_37 = arith.constant 0 : index
    %49 = vector.load %arg14[%c0_36, %c0_37] : memref<144x256xf32, #tpu.memory_space<vmem>>, vector<72x256xf32>
    %50 = arith.truncf %49 : vector<72x256xf32> to vector<72x256xbf16>
    %cst_38 = arith.constant dense<0.000000e+00> : vector<8x256xf32>
    %51 = tpu.matmul %48, %50, %cst_38 {dimension_numbers = #tpu.dot_dimension_numbers<[1], [0], [0], [1], [0, 0, 1, 1], [], []>} : vector<8x72xbf16>, vector<72x256xbf16>, vector<8x256xf32> -> vector<8x256xf32>
    %c0_39 = arith.constant 0 : index
    %c0_40 = arith.constant 0 : index
    %52 = vector.load %arg4[%c0_39, %c0_40] : memref<8x1xf32, #tpu.memory_space<vmem>>, vector<8x1xf32>
    %53 = vector.broadcast %52 : vector<8x1xf32> to vector<8x256xf32>
    %54 = arith.addf %51, %53 : vector<8x256xf32>
    %c0_41 = arith.constant 0 : index
    %c0_42 = arith.constant 0 : index
    %55 = vector.load %arg7[%c0_41, %c0_42] : memref<8x8xbf16, #tpu.memory_space<vmem>>, vector<8x8xbf16>
    %56 = arith.truncf %54 : vector<8x256xf32> to vector<8x256xbf16>
    %cst_43 = arith.constant dense<0.000000e+00> : vector<8x256xf32>
    %57 = tpu.matmul %55, %56, %cst_43 {dimension_numbers = #tpu.dot_dimension_numbers<[1], [0], [0], [1], [0, 0, 1, 1], [], []>} : vector<8x8xbf16>, vector<8x256xbf16>, vector<8x256xf32> -> vector<8x256xf32>
    %c0_44 = arith.constant 0 : index
    %c128_45 = arith.constant 128 : index
    %58 = vector.load %arg13[%c0_44, %c128_45] : memref<8x401xf32, #tpu.memory_space<vmem>>, vector<8x256xf32>
    tpu.vector_store %arg13[%c0_44, %c128_45], %54 {strides = array<i32>} : memref<8x401xf32, #tpu.memory_space<vmem>>, vector<8x256xf32>,
    %c0_46 = arith.constant 0 : index
    %c111_47 = arith.constant 111 : index
    %59 = vector.load %arg13[%c0_46, %c111_47] : memref<8x401xf32, #tpu.memory_space<vmem>>, vector<8x256xf32>
    %c0_48 = arith.constant 0 : index
    %c0_49 = arith.constant 0 : index
    %60 = vector.load %arg10[%c0_48, %c0_49] : memref<8x256xf32, #tpu.memory_space<vmem>>, vector<1x256xf32>
    %61 = vector.broadcast %60 : vector<1x256xf32> to vector<8x256xf32>
    %62 = arith.mulf %59, %61 : vector<8x256xf32>
    %c0_50 = arith.constant 0 : index
    %c0_51 = arith.constant 0 : index
    %63 = vector.load %arg14[%c0_50, %c0_51] : memref<144x256xf32, #tpu.memory_space<vmem>>, vector<8x256xf32>
    tpu.vector_store %arg14[%c0_50, %c0_51], %62 {strides = array<i32>} : memref<144x256xf32, #tpu.memory_space<vmem>>, vector<8x256xf32>,
    %c0_52 = arith.constant 0 : index
    %c112_53 = arith.constant 112 : index
    %64 = vector.load %arg13[%c0_52, %c112_53] : memref<8x401xf32, #tpu.memory_space<vmem>>, vector<8x256xf32>
    %c1_54 = arith.constant 1 : index
    %c0_55 = arith.constant 0 : index
    %65 = vector.load %arg10[%c1_54, %c0_55] : memref<8x256xf32, #tpu.memory_space<vmem>>, vector<1x256xf32>
    %66 = vector.broadcast %65 : vector<1x256xf32> to vector<8x256xf32>
    %67 = arith.mulf %64, %66 : vector<8x256xf32>
    %c8_56 = arith.constant 8 : index
    %c0_57 = arith.constant 0 : index
    %68 = vector.load %arg14[%c8_56, %c0_57] : memref<144x256xf32, #tpu.memory_space<vmem>>, vector<8x256xf32>
    tpu.vector_store %arg14[%c8_56, %c0_57], %67 {strides = array<i32>} : memref<144x256xf32, #tpu.memory_space<vmem>>, vector<8x256xf32>,
    %c0_58 = arith.constant 0 : index
    %c113_59 = arith.constant 113 : index
    %69 = vector.load %arg13[%c0_58, %c113_59] : memref<8x401xf32, #tpu.memory_space<vmem>>, vector<8x256xf32>
    %c2_60 = arith.constant 2 : index
    %c0_61 = arith.constant 0 : index
    %70 = vector.load %arg10[%c2_60, %c0_61] : memref<8x256xf32, #tpu.memory_space<vmem>>, vector<1x256xf32>
    %71 = vector.broadcast %70 : vector<1x256xf32> to vector<8x256xf32>
    %72 = arith.mulf %69, %71 : vector<8x256xf32>
    %c16_62 = arith.constant 16 : index
    %c0_63 = arith.constant 0 : index
    %73 = vector.load %arg14[%c16_62, %c0_63] : memref<144x256xf32, #tpu.memory_space<vmem>>, vector<8x256xf32>
    tpu.vector_store %arg14[%c16_62, %c0_63], %72 {strides = array<i32>} : memref<144x256xf32, #tpu.memory_space<vmem>>, vector<8x256xf32>,
    %c0_64 = arith.constant 0 : index
    %c127_65 = arith.constant 127 : index
    %74 = vector.load %arg13[%c0_64, %c127_65] : memref<8x401xf32, #tpu.memory_space<vmem>>, vector<8x256xf32>
    %c3_66 = arith.constant 3 : index
    %c0_67 = arith.constant 0 : index
    %75 = vector.load %arg10[%c3_66, %c0_67] : memref<8x256xf32, #tpu.memory_space<vmem>>, vector<1x256xf32>
    %76 = vector.broadcast %75 : vector<1x256xf32> to vector<8x256xf32>
    %77 = arith.mulf %74, %76 : vector<8x256xf32>
    %c24_68 = arith.constant 24 : index
    %c0_69 = arith.constant 0 : index
    %78 = vector.load %arg14[%c24_68, %c0_69] : memref<144x256xf32, #tpu.memory_space<vmem>>, vector<8x256xf32>
    tpu.vector_store %arg14[%c24_68, %c0_69], %77 {strides = array<i32>} : memref<144x256xf32, #tpu.memory_space<vmem>>, vector<8x256xf32>,
    %c32_70 = arith.constant 32 : index
    %c0_71 = arith.constant 0 : index
    %79 = vector.load %arg14[%c32_70, %c0_71] : memref<144x256xf32, #tpu.memory_space<vmem>>, vector<8x256xf32>
    tpu.vector_store %arg14[%c32_70, %c0_71], %54 {strides = array<i32>} : memref<144x256xf32, #tpu.memory_space<vmem>>, vector<8x256xf32>,
    %c0_72 = arith.constant 0 : index
    %c129_73 = arith.constant 129 : index
    %80 = vector.load %arg13[%c0_72, %c129_73] : memref<8x401xf32, #tpu.memory_space<vmem>>, vector<8x256xf32>
    %c4_74 = arith.constant 4 : index
    %c0_75 = arith.constant 0 : index
    %81 = vector.load %arg10[%c4_74, %c0_75] : memref<8x256xf32, #tpu.memory_space<vmem>>, vector<1x256xf32>
    %82 = vector.broadcast %81 : vector<1x256xf32> to vector<8x256xf32>
    %83 = arith.mulf %80, %82 : vector<8x256xf32>
    %c40_76 = arith.constant 40 : index
    %c0_77 = arith.constant 0 : index
    %84 = vector.load %arg14[%c40_76, %c0_77] : memref<144x256xf32, #tpu.memory_space<vmem>>, vector<8x256xf32>
    tpu.vector_store %arg14[%c40_76, %c0_77], %83 {strides = array<i32>} : memref<144x256xf32, #tpu.memory_space<vmem>>, vector<8x256xf32>,
    %c0_78 = arith.constant 0 : index
    %c143_79 = arith.constant 143 : index
    %85 = vector.load %arg13[%c0_78, %c143_79] : memref<8x401xf32, #tpu.memory_space<vmem>>, vector<8x256xf32>
    %c5_80 = arith.constant 5 : index
    %c0_81 = arith.constant 0 : index
    %86 = vector.load %arg10[%c5_80, %c0_81] : memref<8x256xf32, #tpu.memory_space<vmem>>, vector<1x256xf32>
    %87 = vector.broadcast %86 : vector<1x256xf32> to vector<8x256xf32>
    %88 = arith.mulf %85, %87 : vector<8x256xf32>
    %c48_82 = arith.constant 48 : index
    %c0_83 = arith.constant 0 : index
    %89 = vector.load %arg14[%c48_82, %c0_83] : memref<144x256xf32, #tpu.memory_space<vmem>>, vector<8x256xf32>
    tpu.vector_store %arg14[%c48_82, %c0_83], %88 {strides = array<i32>} : memref<144x256xf32, #tpu.memory_space<vmem>>, vector<8x256xf32>,
    %c0_84 = arith.constant 0 : index
    %c144_85 = arith.constant 144 : index
    %90 = vector.load %arg13[%c0_84, %c144_85] : memref<8x401xf32, #tpu.memory_space<vmem>>, vector<8x256xf32>
    %c6_86 = arith.constant 6 : index
    %c0_87 = arith.constant 0 : index
    %91 = vector.load %arg10[%c6_86, %c0_87] : memref<8x256xf32, #tpu.memory_space<vmem>>, vector<1x256xf32>
    %92 = vector.broadcast %91 : vector<1x256xf32> to vector<8x256xf32>
    %93 = arith.mulf %90, %92 : vector<8x256xf32>
    %c56_88 = arith.constant 56 : index
    %c0_89 = arith.constant 0 : index
    %94 = vector.load %arg14[%c56_88, %c0_89] : memref<144x256xf32, #tpu.memory_space<vmem>>, vector<8x256xf32>
    tpu.vector_store %arg14[%c56_88, %c0_89], %93 {strides = array<i32>} : memref<144x256xf32, #tpu.memory_space<vmem>>, vector<8x256xf32>,
    %c0_90 = arith.constant 0 : index
    %c145_91 = arith.constant 145 : index
    %95 = vector.load %arg13[%c0_90, %c145_91] : memref<8x401xf32, #tpu.memory_space<vmem>>, vector<8x256xf32>
    %c7_92 = arith.constant 7 : index
    %c0_93 = arith.constant 0 : index
    %96 = vector.load %arg10[%c7_92, %c0_93] : memref<8x256xf32, #tpu.memory_space<vmem>>, vector<1x256xf32>
    %97 = vector.broadcast %96 : vector<1x256xf32> to vector<8x256xf32>
    %98 = arith.mulf %95, %97 : vector<8x256xf32>
    %c64_94 = arith.constant 64 : index
    %c0_95 = arith.constant 0 : index
    %99 = vector.load %arg14[%c64_94, %c0_95] : memref<144x256xf32, #tpu.memory_space<vmem>>, vector<8x256xf32>
    tpu.vector_store %arg14[%c64_94, %c0_95], %98 {strides = array<i32>} : memref<144x256xf32, #tpu.memory_space<vmem>>, vector<8x256xf32>,
    %c0_96 = arith.constant 0 : index
    %c0_97 = arith.constant 0 : index
    %c0_98 = arith.constant 0 : index
    %100 = vector.load %arg2[%c0_96, %c0_97, %c0_98] : memref<1x8x256xf32, #tpu.memory_space<vmem>>, vector<1x8x256xf32>
    %101 = vector.shape_cast %100 : vector<1x8x256xf32> to vector<8x256xf32>
    %c0_99 = arith.constant 0 : index
    %c0_100 = arith.constant 0 : index
    %102 = vector.load %arg8[%c0_99, %c0_100] : memref<8x8xbf16, #tpu.memory_space<vmem>>, vector<8x8xbf16>
    %103 = arith.truncf %101 : vector<8x256xf32> to vector<8x256xbf16>
    %cst_101 = arith.constant dense<0.000000e+00> : vector<8x256xf32>
    %104 = tpu.matmul %102, %103, %cst_101 {dimension_numbers = #tpu.dot_dimension_numbers<[1], [0], [0], [1], [0, 0, 1, 1], [], []>} : vector<8x8xbf16>, vector<8x256xbf16>, vector<8x256xf32> -> vector<8x256xf32>
    %105 = arith.addf %57, %104 : vector<8x256xf32>
    %c0_102 = arith.constant 0 : index
    %c0_103 = arith.constant 0 : index
    %106 = vector.load %arg9[%c0_102, %c0_103] : memref<8x1xf32, #tpu.memory_space<vmem>>, vector<8x1xf32>
    %107 = vector.broadcast %106 : vector<8x1xf32> to vector<8x256xf32>
    %108 = arith.addf %105, %107 : vector<8x256xf32>
    %c0_104 = arith.constant 0 : index
    %c128_105 = arith.constant 128 : index
    %109 = vector.load %arg13[%c0_104, %c128_105] : memref<8x401xf32, #tpu.memory_space<vmem>>, vector<8x256xf32>
    tpu.vector_store %arg13[%c0_104, %c128_105], %101 {strides = array<i32>} : memref<8x401xf32, #tpu.memory_space<vmem>>, vector<8x256xf32>,
    %c0_106 = arith.constant 0 : index
    %c111_107 = arith.constant 111 : index
    %110 = vector.load %arg13[%c0_106, %c111_107] : memref<8x401xf32, #tpu.memory_space<vmem>>, vector<8x256xf32>
    %c0_108 = arith.constant 0 : index
    %c0_109 = arith.constant 0 : index
    %111 = vector.load %arg10[%c0_108, %c0_109] : memref<8x256xf32, #tpu.memory_space<vmem>>, vector<1x256xf32>
    %112 = vector.broadcast %111 : vector<1x256xf32> to vector<8x256xf32>
    %113 = arith.mulf %110, %112 : vector<8x256xf32>
    %c72 = arith.constant 72 : index
    %c0_110 = arith.constant 0 : index
    %114 = vector.load %arg14[%c72, %c0_110] : memref<144x256xf32, #tpu.memory_space<vmem>>, vector<8x256xf32>
    tpu.vector_store %arg14[%c72, %c0_110], %113 {strides = array<i32>} : memref<144x256xf32, #tpu.memory_space<vmem>>, vector<8x256xf32>,
    %c0_111 = arith.constant 0 : index
    %c112_112 = arith.constant 112 : index
    %115 = vector.load %arg13[%c0_111, %c112_112] : memref<8x401xf32, #tpu.memory_space<vmem>>, vector<8x256xf32>
    %c1_113 = arith.constant 1 : index
    %c0_114 = arith.constant 0 : index
    %116 = vector.load %arg10[%c1_113, %c0_114] : memref<8x256xf32, #tpu.memory_space<vmem>>, vector<1x256xf32>
    %117 = vector.broadcast %116 : vector<1x256xf32> to vector<8x256xf32>
    %118 = arith.mulf %115, %117 : vector<8x256xf32>
    %c80 = arith.constant 80 : index
    %c0_115 = arith.constant 0 : index
    %119 = vector.load %arg14[%c80, %c0_115] : memref<144x256xf32, #tpu.memory_space<vmem>>, vector<8x256xf32>
    tpu.vector_store %arg14[%c80, %c0_115], %118 {strides = array<i32>} : memref<144x256xf32, #tpu.memory_space<vmem>>, vector<8x256xf32>,
    %c0_116 = arith.constant 0 : index
    %c113_117 = arith.constant 113 : index
    %120 = vector.load %arg13[%c0_116, %c113_117] : memref<8x401xf32, #tpu.memory_space<vmem>>, vector<8x256xf32>
    %c2_118 = arith.constant 2 : index
    %c0_119 = arith.constant 0 : index
    %121 = vector.load %arg10[%c2_118, %c0_119] : memref<8x256xf32, #tpu.memory_space<vmem>>, vector<1x256xf32>
    %122 = vector.broadcast %121 : vector<1x256xf32> to vector<8x256xf32>
    %123 = arith.mulf %120, %122 : vector<8x256xf32>
    %c88 = arith.constant 88 : index
    %c0_120 = arith.constant 0 : index
    %124 = vector.load %arg14[%c88, %c0_120] : memref<144x256xf32, #tpu.memory_space<vmem>>, vector<8x256xf32>
    tpu.vector_store %arg14[%c88, %c0_120], %123 {strides = array<i32>} : memref<144x256xf32, #tpu.memory_space<vmem>>, vector<8x256xf32>,
    %c0_121 = arith.constant 0 : index
    %c127_122 = arith.constant 127 : index
    %125 = vector.load %arg13[%c0_121, %c127_122] : memref<8x401xf32, #tpu.memory_space<vmem>>, vector<8x256xf32>
    %c3_123 = arith.constant 3 : index
    %c0_124 = arith.constant 0 : index
    %126 = vector.load %arg10[%c3_123, %c0_124] : memref<8x256xf32, #tpu.memory_space<vmem>>, vector<1x256xf32>
    %127 = vector.broadcast %126 : vector<1x256xf32> to vector<8x256xf32>
    %128 = arith.mulf %125, %127 : vector<8x256xf32>
    %c96 = arith.constant 96 : index
    %c0_125 = arith.constant 0 : index
    %129 = vector.load %arg14[%c96, %c0_125] : memref<144x256xf32, #tpu.memory_space<vmem>>, vector<8x256xf32>
    tpu.vector_store %arg14[%c96, %c0_125], %128 {strides = array<i32>} : memref<144x256xf32, #tpu.memory_space<vmem>>, vector<8x256xf32>,
    %c104 = arith.constant 104 : index
    %c0_126 = arith.constant 0 : index
    %130 = vector.load %arg14[%c104, %c0_126] : memref<144x256xf32, #tpu.memory_space<vmem>>, vector<8x256xf32>
    tpu.vector_store %arg14[%c104, %c0_126], %101 {strides = array<i32>} : memref<144x256xf32, #tpu.memory_space<vmem>>, vector<8x256xf32>,
    %c0_127 = arith.constant 0 : index
    %c129_128 = arith.constant 129 : index
    %131 = vector.load %arg13[%c0_127, %c129_128] : memref<8x401xf32, #tpu.memory_space<vmem>>, vector<8x256xf32>
    %c4_129 = arith.constant 4 : index
    %c0_130 = arith.constant 0 : index
    %132 = vector.load %arg10[%c4_129, %c0_130] : memref<8x256xf32, #tpu.memory_space<vmem>>, vector<1x256xf32>
    %133 = vector.broadcast %132 : vector<1x256xf32> to vector<8x256xf32>
    %134 = arith.mulf %131, %133 : vector<8x256xf32>
    %c112_131 = arith.constant 112 : index
    %c0_132 = arith.constant 0 : index
    %135 = vector.load %arg14[%c112_131, %c0_132] : memref<144x256xf32, #tpu.memory_space<vmem>>, vector<8x256xf32>
    tpu.vector_store %arg14[%c112_131, %c0_132], %134 {strides = array<i32>} : memref<144x256xf32, #tpu.memory_space<vmem>>, vector<8x256xf32>,
    %c0_133 = arith.constant 0 : index
    %c143_134 = arith.constant 143 : index
    %136 = vector.load %arg13[%c0_133, %c143_134] : memref<8x401xf32, #tpu.memory_space<vmem>>, vector<8x256xf32>
    %c5_135 = arith.constant 5 : index
    %c0_136 = arith.constant 0 : index
    %137 = vector.load %arg10[%c5_135, %c0_136] : memref<8x256xf32, #tpu.memory_space<vmem>>, vector<1x256xf32>
    %138 = vector.broadcast %137 : vector<1x256xf32> to vector<8x256xf32>
    %139 = arith.mulf %136, %138 : vector<8x256xf32>
    %c120 = arith.constant 120 : index
    %c0_137 = arith.constant 0 : index
    %140 = vector.load %arg14[%c120, %c0_137] : memref<144x256xf32, #tpu.memory_space<vmem>>, vector<8x256xf32>
    tpu.vector_store %arg14[%c120, %c0_137], %139 {strides = array<i32>} : memref<144x256xf32, #tpu.memory_space<vmem>>, vector<8x256xf32>,
    %c0_138 = arith.constant 0 : index
    %c144_139 = arith.constant 144 : index
    %141 = vector.load %arg13[%c0_138, %c144_139] : memref<8x401xf32, #tpu.memory_space<vmem>>, vector<8x256xf32>
    %c6_140 = arith.constant 6 : index
    %c0_141 = arith.constant 0 : index
    %142 = vector.load %arg10[%c6_140, %c0_141] : memref<8x256xf32, #tpu.memory_space<vmem>>, vector<1x256xf32>
    %143 = vector.broadcast %142 : vector<1x256xf32> to vector<8x256xf32>
    %144 = arith.mulf %141, %143 : vector<8x256xf32>
    %c128_142 = arith.constant 128 : index
    %c0_143 = arith.constant 0 : index
    %145 = vector.load %arg14[%c128_142, %c0_143] : memref<144x256xf32, #tpu.memory_space<vmem>>, vector<8x256xf32>
    tpu.vector_store %arg14[%c128_142, %c0_143], %144 {strides = array<i32>} : memref<144x256xf32, #tpu.memory_space<vmem>>, vector<8x256xf32>,
    %c0_144 = arith.constant 0 : index
    %c145_145 = arith.constant 145 : index
    %146 = vector.load %arg13[%c0_144, %c145_145] : memref<8x401xf32, #tpu.memory_space<vmem>>, vector<8x256xf32>
    %c7_146 = arith.constant 7 : index
    %c0_147 = arith.constant 0 : index
    %147 = vector.load %arg10[%c7_146, %c0_147] : memref<8x256xf32, #tpu.memory_space<vmem>>, vector<1x256xf32>
    %148 = vector.broadcast %147 : vector<1x256xf32> to vector<8x256xf32>
    %149 = arith.mulf %146, %148 : vector<8x256xf32>
    %c136 = arith.constant 136 : index
    %c0_148 = arith.constant 0 : index
    %150 = vector.load %arg14[%c136, %c0_148] : memref<144x256xf32, #tpu.memory_space<vmem>>, vector<8x256xf32>
    tpu.vector_store %arg14[%c136, %c0_148], %149 {strides = array<i32>} : memref<144x256xf32, #tpu.memory_space<vmem>>, vector<8x256xf32>,
    %c0_149 = arith.constant 0 : index
    %c0_150 = arith.constant 0 : index
    %151 = vector.load %arg5[%c0_149, %c0_150] : memref<8x144xbf16, #tpu.memory_space<vmem>>, vector<8x144xbf16>
    %c0_151 = arith.constant 0 : index
    %c0_152 = arith.constant 0 : index
    %152 = vector.load %arg14[%c0_151, %c0_152] : memref<144x256xf32, #tpu.memory_space<vmem>>, vector<144x256xf32>
    %153 = arith.truncf %152 : vector<144x256xf32> to vector<144x256xbf16>
    %cst_153 = arith.constant dense<0.000000e+00> : vector<8x256xf32>
    %154 = tpu.matmul %151, %153, %cst_153 {dimension_numbers = #tpu.dot_dimension_numbers<[1], [0], [0], [1], [0, 0, 1, 1], [], []>} : vector<8x144xbf16>, vector<144x256xbf16>, vector<8x256xf32> -> vector<8x256xf32>
    %c0_154 = arith.constant 0 : index
    %c0_155 = arith.constant 0 : index
    %155 = vector.load %arg6[%c0_154, %c0_155] : memref<8x1xf32, #tpu.memory_space<vmem>>, vector<8x1xf32>
    %156 = vector.broadcast %155 : vector<8x1xf32> to vector<8x256xf32>
    %157 = arith.addf %154, %156 : vector<8x256xf32>
    %cst_156 = arith.constant dense<0.000000e+00> : vector<8xf32>
    %158 = vector.multi_reduction <add>, %157, %cst_156 [1] : vector<8x256xf32> to vector<8xf32>
    %159 = vector.shape_cast %158 : vector<8xf32> to vector<8x1xf32>
    %160 = arith.mulf %157, %157 : vector<8x256xf32>
    %cst_157 = arith.constant dense<0.000000e+00> : vector<8xf32>
    %161 = vector.multi_reduction <add>, %160, %cst_157 [1] : vector<8x256xf32> to vector<8xf32>
    %162 = vector.shape_cast %161 : vector<8xf32> to vector<8x1xf32>
    %cst_158 = arith.constant 3.906250e-03 : f32
    %163 = vector.broadcast %cst_158 : f32 to vector<8x1xf32>
    %164 = arith.mulf %159, %163 : vector<8x1xf32>
    %cst_159 = arith.constant 3.906250e-03 : f32
    %165 = vector.broadcast %cst_159 : f32 to vector<8x1xf32>
    %166 = arith.mulf %162, %165 : vector<8x1xf32>
    %167 = arith.mulf %164, %164 : vector<8x1xf32>
    %168 = arith.subf %166, %167 : vector<8x1xf32>
    %169 = vector.broadcast %164 : vector<8x1xf32> to vector<8x256xf32>
    %170 = arith.subf %157, %169 : vector<8x256xf32>
    %cst_160 = arith.constant 9.99999974E-6 : f32
    %171 = vector.broadcast %cst_160 : f32 to vector<8x1xf32>
    %172 = arith.addf %168, %171 : vector<8x1xf32>
    %173 = math.rsqrt %172 : vector<8x1xf32>
    %174 = vector.broadcast %173 : vector<8x1xf32> to vector<8x256xf32>
    %175 = arith.mulf %170, %174 : vector<8x256xf32>
    %c0_161 = arith.constant 0 : index
    %176 = memref.load %arg11[%c0_161] : memref<1xf32, #tpu.memory_space<smem>>
    %cst_162 = arith.constant 0.000000e+00 : f32
    %177 = vector.broadcast %cst_162 : f32 to vector<8x256xf32>
    %178 = arith.cmpf oge, %175, %177 : vector<8x256xf32>
    %179 = vector.broadcast %176 : f32 to vector<8x256xf32>
    %180 = arith.mulf %179, %175 : vector<8x256xf32>
    %181 = arith.select %178, %175, %180 : vector<8x256xi1>, vector<8x256xf32>
    %182 = arith.addf %181, %108 : vector<8x256xf32>
    %c0_163 = arith.constant 0 : index
    %c0_164 = arith.constant 0 : index
    %c0_165 = arith.constant 0 : index
    %183 = vector.load %arg12[%c0_163, %c0_164, %c0_165] : memref<1x8x256xf32, #tpu.memory_space<vmem>>, vector<1x8x256xf32>
    %184 = vector.shape_cast %183 : vector<1x8x256xf32> to vector<8x256xf32>
    %185 = vector.shape_cast %182 : vector<8x256xf32> to vector<1x8x256xf32>
    tpu.vector_store %arg12[%c0_163, %c0_164, %c0_165], %185 {strides = array<i32>} : memref<1x8x256xf32, #tpu.memory_space<vmem>>, vector<1x8x256xf32>,
    return
  }
  func.func @transform_0(%arg0: i32) -> (i32, i32, i32) {
    %c0_i32 = arith.constant 0 : i32
    %c0_i32_0 = arith.constant 0 : i32
    %c0_i32_1 = arith.constant 0 : i32
    return %arg0, %c0_i32, %c0_i32_0 : i32, i32, i32
  }
  func.func @transform_1(%arg0: i32) -> (i32, i32, i32) {
    %c0_i32 = arith.constant 0 : i32
    %c0_i32_0 = arith.constant 0 : i32
    %c0_i32_1 = arith.constant 0 : i32
    return %arg0, %c0_i32, %c0_i32_0 : i32, i32, i32
  }
  func.func @transform_2(%arg0: i32) -> (i32, i32) {
    %c0_i32 = arith.constant 0 : i32
    %c0_i32_0 = arith.constant 0 : i32
    %c0_i32_1 = arith.constant 0 : i32
    return %c0_i32, %c0_i32_0 : i32, i32
  }
  func.func @transform_3(%arg0: i32) -> (i32, i32) {
    %c0_i32 = arith.constant 0 : i32
    %c0_i32_0 = arith.constant 0 : i32
    %c0_i32_1 = arith.constant 0 : i32
    return %c0_i32, %c0_i32_0 : i32, i32
  }
  func.func @transform_4(%arg0: i32) -> (i32, i32) {
    %c0_i32 = arith.constant 0 : i32
    %c0_i32_0 = arith.constant 0 : i32
    %c0_i32_1 = arith.constant 0 : i32
    return %c0_i32, %c0_i32_0 : i32, i32
  }
  func.func @transform_5(%arg0: i32) -> (i32, i32) {
    %c0_i32 = arith.constant 0 : i32
    %c0_i32_0 = arith.constant 0 : i32
    %c0_i32_1 = arith.constant 0 : i32
    return %c0_i32, %c0_i32_0 : i32, i32
  }
  func.func @transform_6(%arg0: i32) -> (i32, i32) {
    %c0_i32 = arith.constant 0 : i32
    %c0_i32_0 = arith.constant 0 : i32
    %c0_i32_1 = arith.constant 0 : i32
    return %c0_i32, %c0_i32_0 : i32, i32
  }
  func.func @transform_7(%arg0: i32) -> (i32, i32) {
    %c0_i32 = arith.constant 0 : i32
    %c0_i32_0 = arith.constant 0 : i32
    %c0_i32_1 = arith.constant 0 : i32
    return %c0_i32, %c0_i32_0 : i32, i32
  }
  func.func @transform_8(%arg0: i32) -> (i32, i32) {
    %c0_i32 = arith.constant 0 : i32
    %c0_i32_0 = arith.constant 0 : i32
    %c0_i32_1 = arith.constant 0 : i32
    return %c0_i32, %c0_i32_0 : i32, i32
  }
  func.func @transform_9(%arg0: i32) -> (i32, i32) {
    %c0_i32 = arith.constant 0 : i32
    %c0_i32_0 = arith.constant 0 : i32
    %c0_i32_1 = arith.constant 0 : i32
    return %c0_i32, %c0_i32_0 : i32, i32
  }
  func.func @transform_10(%arg0: i32) -> i32 {
    %c0_i32 = arith.constant 0 : i32
    %c0_i32_0 = arith.constant 0 : i32
    return %c0_i32 : i32
  }
  func.func @transform_11(%arg0: i32) -> (i32, i32, i32) {
    %c0_i32 = arith.constant 0 : i32
    %c0_i32_0 = arith.constant 0 : i32
    %c0_i32_1 = arith.constant 0 : i32
    return %arg0, %c0_i32, %c0_i32_0 : i32, i32, i32
  }
}

</mosaic_0001>

<bundles_post_ra>
// kernel: up_conv_forward.1
= control target key start
LH: loop header
LB: loop body
LE: loop exit
PB: predicated region body
PF: predicated region fallthrough
CT: control target
= control target key end

     0   :  { %s2078_s19 = smov 0   ;;  %s2590_s0 = inlined_call_operand.vmem [shape: f32[2,8,256], index: 0, kind: input, shape index: {}]   ;;  %s2591_s1 = inlined_call_operand.vmem [shape: f32[2,8,256], index: 1, kind: input, shape index: {}]   ;;  %s2592_s2 = inlined_call_operand.vmem [shape: bf16[8,72], index: 2, kind: input, shape index: {}]   ;;  %s2593_s3 = inlined_call_operand.vmem [shape: f32[8,1], index: 3, kind: input, shape index: {}]   ;;  %s2594_s4 = inlined_call_operand.vmem [shape: bf16[8,144], index: 4, kind: input, shape index: {}]   ;;  %s2595_s5 = inlined_call_operand.vmem [shape: f32[8,1], index: 5, kind: input, shape index: {}]   ;;  %s2596_s6 = inlined_call_operand.vmem [shape: bf16[8,8], index: 6, kind: input, shape index: {}]   ;;  %s2597_s7 = inlined_call_operand.vmem [shape: bf16[8,8], index: 7, kind: input, shape index: {}]   ;;  %s2598_s8 = inlined_call_operand.vmem [shape: f32[8,1], index: 8, kind: input, shape index: {}]   ;;  %s2599_s9 = inlined_call_operand.vmem [shape: f32[8,256], index: 9, kind: input, shape index: {}]   ;;  %s2600_s10 = inlined_call_operand.<no memory space> [shape: f32[1], index: 10, kind: input, shape index: {}]   ;;  %s2601_s11 = inlined_call_operand.vmem [shape: f32[2,8,256], index: 11, kind: output, shape index: {}]  }
   0x1   :  { %16 = sst [smem:[#allocation4]] %s2600_s10 }
   0x2 LB: > { %s1788_s20 = sadd.s32 4294967295, %s2003_s19   ;;  %p1792_p0 = scmp.ge.s32.totalorder %s2003_s19, 1  ;;  %s2003_s19 = sphi %s2078_s19, %s22_s19  }
   0x3   : > { %p348_p1 = scmp.lt.s32.totalorder %s2003_s19, 3 }
   0x5   : > { %p349_p2 = pnand %p1792_p0, %p348_p1 }
   0x6   : > { %v421_v0 = vlaneseq (!%p349_p2)  ;;  %v1799_v2 = vld [vmem:[%s2599_s9 + $0x1] ss:$8 sm:$0x3] (!%p349_p2)  ;;  %v419_v3 = vld [vmem:[%s2599_s9] ss:$8 sm:$0x3] (!%p349_p2) }
   0x7   : > { %352 = sbr.rel (%p349_p2) target bundleno = 1072 (0x430), region = 64  ;;  %s2005_s24 = smov (!%p349_p2), 112   ;;  %v1800_v10 = vld [vmem:[%s2599_s9 + $0x2] ss:$8 sm:$0x3] (!%p349_p2)  ;;  %vm410_vm0 = vcmask (!%p349_p2), 138240  }
   0x8   : > { %v422_v1 = vshrl.u32 (!%p349_p2), %v421_v0, 7  ;;  %s2006_s25 = smov (!%p349_p2), 111   ;;  %v2007_v11 = vmov (!%p349_p2), 0.0   ;;  %v1801_v14 = vld [vmem:[%s2599_s9 + $0x3] ss:$8 sm:$0x3] (!%p349_p2) }
   0x9   : > { %411 = vst.msk [vmem:[#allocation2 + $0x18] sm:$0xff] (!%p349_p2), %vm410_vm0, %v2007_v11  ;;  %s2008_s30 = smov (!%p349_p2), 113   ;;  %v1802_v17 = vld [vmem:[%s2599_s9 + $0x4] ss:$8 sm:$0x3] (!%p349_p2)  ;;  %s2009_s14 = smov (!%p349_p2), 127  }
   0xa   : > { %v2092_v4 = vsub.s32 (!%p349_p2), 0, %v422_v1  ;;  %v2094_v5 = vsub.s32 (!%p349_p2), 1, %v422_v1  ;;  %v1803_v20 = vld [vmem:[%s2599_s9 + $0x5] ss:$8 sm:$0x3] (!%p349_p2)  ;;  %s2010_s17 = smov (!%p349_p2), 1  }
   0xb   : > { %v1804_v23 = vld [vmem:[%s2599_s9 + $0x6] ss:$8 sm:$0x3] (!%p349_p2)  ;;  %s2011_s22 = smov (!%p349_p2), 15   ;;  %s2012_s26 = smov (!%p349_p2), 16   ;;  %vm474_vm1 = vcmask (!%p349_p2), 916480  }
   0xc   : > { %v465_v6 = vrot.slane (!%p349_p2), %v1799_v2, %v2092_v4  ;;  %v424_v7 = vrot.slane (!%p349_p2), %v419_v3, %v2092_v4  ;;  %v469_v8 = vrot.slane (!%p349_p2), %v1799_v2, %v2094_v5  ;;  %v428_v9 = vrot.slane (!%p349_p2), %v419_v3, %v2094_v5  ;;  %v1805_v26 = vld [vmem:[%s2599_s9 + $0x7] ss:$8 sm:$0x3] (!%p349_p2)  ;;  %s2013_s27 = smov (!%p349_p2), 17   ;;  %p393_p3 = scmp.lt.s32.totalorder (!%p349_p2), %s1788_s20, 1 }
   0xd   : > { %v511_v12 = vrot.slane (!%p349_p2), %v1800_v10, %v2094_v5  ;;  %v507_v13 = vrot.slane (!%p349_p2), %v1800_v10, %v2092_v4  ;;  %v553_v15 = vrot.slane (!%p349_p2), %v1801_v14, %v2094_v5  ;;  %v549_v16 = vrot.slane (!%p349_p2), %v1801_v14, %v2092_v4  ;;  %s1709_s15 = sld [smem:[#allocation4]] (!%p349_p2) }
   0xe   : > { %470 = vrot.lane.b32.xlu1 %v465_v6, %s2005_s24  ;;  %429 = vrot.lane.b32.xlu0 %v424_v7, %s2006_s25  ;;  %v597_v18 = vrot.slane %v1802_v17, %v2094_v5  ;;  %v593_v19 = vrot.slane %v1802_v17, %v2092_v4  ;;  %v637_v21 = vrot.slane %v1803_v20, %v2094_v5  ;;  %s2603_s20 = smov (!%p393_p3, %s1788_s20), 1  ;;  %vm433_vm2 = vcmask 908288  }
   0xf   : > { %v633_v22 = vrot.slane %v1803_v20, %v2092_v4  ;;  %v673_v24 = vrot.slane %v1804_v23, %v2092_v4  ;;  %v677_v25 = vrot.slane %v1804_v23, %v2094_v5  ;;  %v717_v27 = vrot.slane %v1805_v26, %v2094_v5  ;;  %s2153_s28 = sshll.u32 %s2603_s20, 4 }
  0x10   : > { %v713_v28 = vrot.slane %v1805_v26, %v2092_v4  ;;  %s397_s13 = scalar_lea.vmem %s2590_s0, %s2153_s28  ;;  %vm558_vm3 = vcmask 1039360   ;;  %vm516_vm4 = vcmask 924672   ;;  %vm491_vm5 = vcmask 130048   ;;  %v2183_v3 = vld [vmem:[#allocation2 + $0x18] sm:$0xff]  ;;  %s402_s12 = scalar_lea.vmem %s2591_s1, %s2153_s28 }
  0x11   : > { %v2162_v42 = vld [vmem:[%s397_s13] sm:$0xff]  ;;  %v2164_v43 = vld [vmem:[%s397_s13 + $0x8] sm:$0xff]  ;;  %vm575_vm6 = vcmask 7168   ;;  %vm533_vm7 = vcmask 121856   ;;  %vm783_vm8 = vcmask 1043456   ;;  %vm779_vm9 = vcmask 588800   ;;  %s407_s21 = scalar_lea.vmem %s2601_s11, %s2153_s28 }
  0x12   : > { %472 = vrot.lane.b32.xlu1 %v469_v8, %s2005_s24  ;;  %431 = vrot.lane.b32.xlu0 %v428_v9, %s2006_s25  ;;  %vm1155_vm10 = vcmask 64512  }
  0x16   : > { %514 = vrot.lane.b32.xlu1 %v511_v12, %s2008_s30  ;;  %512 = vrot.lane.b32.xlu0 %v507_v13, %s2008_s30 }
  0x1a   : > { %556 = vrot.lane.b32.xlu1 %v553_v15, %s2009_s14  ;;  %554 = vrot.lane.b32.xlu0 %v549_v16, %s2009_s14 }
  0x1e   : > { %600 = vrot.lane.b32.xlu1 %v597_v18, %s2010_s17  ;;  %598 = vrot.lane.b32.xlu0 %v593_v19, %s2010_s17 }
  0x22   : > { %640 = vrot.lane.b32.xlu1 %v637_v21, %s2011_s22  ;;  %638 = vrot.lane.b32.xlu0 %v633_v22, %s2011_s22 }
  0x26   : > { %678 = vrot.lane.b32.xlu0 %v673_v24, %s2012_s26  ;;  %680 = vrot.lane.b32.xlu1 %v677_v25, %s2012_s26  ;;  %v2014_v25 = vmov 0  }
  0x27   : > { %822 = vmatprep.mubr.bf16.mxu0 %v2014_v25  ;;  %1892 = vset.pattern.permute.xlu0 %v2014_v25 }
  0x2a   : > { %720 = vrot.lane.b32.xlu1 %v717_v27, %s2013_s27  ;;  %718 = vrot.lane.b32.xlu0 %v713_v28, %s2013_s27  ;;  %v839_v27 = vld [vmem:[%s2599_s9] ss:$8 sm:$0x3] }
  0x2b   : > { %v844_v28 = vrot.slane %v839_v27, %v2092_v4 }
  0x80   : > { %v471_v29 = vpop.permute.xlu1 %470  ;;  %v430_v30 = vpop.permute.xlu0 %429 }
  0x81   : > { %v479_v31 = vmul.f32 0.0, %v471_v29  ;;  %v438_v32 = vmul.f32 0.0, %v430_v30 }
  0x83   : > { %444 = vrot.lane.b32.xlu0 %v438_v32, %s2013_s27  ;;  %485 = vrot.lane.b32.xlu1 %v479_v31, %s2012_s26  ;;  %v1808_v31 = vld [vmem:[%s2599_s9 + $0x1] ss:$8 sm:$0x3] }
  0x84   : > { %v473_v33 = vpop.permute.xlu1 %472  ;;  %v432_v34 = vpop.permute.xlu0 %431  ;;  %v887_v32 = vrot.slane %v1808_v31, %v2094_v5 }
  0x85   : > { %v475_v41 = vsel %vm474_vm1, %v471_v29, %v473_v33  ;;  %v481_v47 = vmul.f32 %v473_v33, %v2164_v43  ;;  %v434_v48 = vsel %vm433_vm2, %v430_v30, %v432_v34  ;;  %v440_v52 = vmul.f32 %v432_v34, %v2164_v43  ;;  %v773_v30 = vld [vmem:[%s2593_s3] sm:$0xff] }
  0x86   : > { %v480_v46 = vmul.f32 %v475_v41, %v2162_v42  ;;  %v439_v51 = vmul.f32 %v434_v48, %v2162_v42  ;;  %v848_v29 = vrot.slane %v839_v27, %v2094_v5  ;;  %v883_v33 = vrot.slane %v1808_v31, %v2092_v4  ;;  %v1809_v34 = vld [vmem:[%s2599_s9 + $0x2] ss:$8 sm:$0x3]  ;;  %v1813_v48 = vld [vmem:[%s2599_s9 + $0x6] ss:$8 sm:$0x3] }
  0x88   : > { %v515_v35 = vpop.permute.xlu1 %514  ;;  %v513_v36 = vpop.permute.xlu0 %512  ;;  %v1857_v55 = vpack.i.bf16 %v481_v47, %v480_v46  ;;  %v1852_v60 = vpack.i.bf16 %v440_v52, %v439_v51  ;;  %v1814_v51 = vld [vmem:[%s2599_s9 + $0x7] ss:$8 sm:$0x3] }
  0x89   : > { %v521_v37 = vmul.f32 0.0, %v513_v36  ;;  %v517_v59 = vsel %vm516_vm4, %v513_v36, %v515_v35  ;;  %v523_v63 = vmul.f32 %v515_v35, %v2164_v43  ;;  %v926_v35 = vrot.slane %v1809_v34, %v2094_v5 }
  0x8a   : > { %v522_v0 = vmul.f32 %v517_v59, %v2162_v42  ;;  %v922_v36 = vrot.slane %v1809_v34, %v2092_v4  ;;  %v1123_v52 = vrot.slane %v1814_v51, %v2094_v5 }
  0x8b   : > { %527 = vrot.lane.b32.xlu0 %v521_v37, %s2011_s22  ;;  %v1810_v37 = vld [vmem:[%s2599_s9 + $0x3] ss:$8 sm:$0x3] }
  0x8c   : > { %v557_v38 = vpop.permute.xlu1 %556  ;;  %v555_v39 = vpop.permute.xlu0 %554  ;;  %v1862_v12 = vpack.i.bf16 %v523_v63, %v522_v0  ;;  %v1821_v63 = vld [vmem:[%s2599_s9 + $0x3] ss:$8 sm:$0x3] }
  0x8d   : > { %v563_v40 = vmul.f32 0.0, %v555_v39  ;;  %v559_v50 = vsel %vm558_vm3, %v555_v39, %v557_v38  ;;  %v565_v56 = vmul.f32 %v557_v38, %v2164_v43  ;;  %v965_v38 = vrot.slane %v1810_v37, %v2094_v5 }
  0x8e   : > { %v564_v57 = vmul.f32 %v559_v50, %v2162_v42  ;;  %v961_v39 = vrot.slane %v1810_v37, %v2092_v4  ;;  %v1080_v50 = vrot.slane %v1813_v48, %v2092_v4  ;;  %v1395_v0 = vrot.slane %v1821_v63, %v2094_v5 }
  0x8f   : > { %569 = vrot.lane.b32.xlu1 %v563_v40, %s2010_s17  ;;  %v1811_v40 = vld [vmem:[%s2599_s9 + $0x4] ss:$8 sm:$0x3] }
  0x90   : > { %v601_v44 = vpop.permute.xlu1 %600  ;;  %v599_v45 = vpop.permute.xlu0 %598  ;;  %v1867_v1 = vpack.i.bf16 %v565_v56, %v564_v57  ;;  %v1006_v41 = vrot.slane %v1811_v40, %v2094_v5  ;;  %v1819_v57 = vld [vmem:[%s2599_s9 + $0x1] ss:$8 sm:$0x3] }
  0x91   : > { %v606_v49 = vmul.f32 %v599_v45, %v2162_v42  ;;  %v602_v6 = vsel %vm575_vm6, %v599_v45, %v601_v44  ;;  %v608_v10 = vmul.f32 %v601_v44, %v2183_v3  ;;  %v1002_v44 = vrot.slane %v1811_v40, %v2092_v4  ;;  %v1812_v45 = vld [vmem:[%s2599_s9 + $0x5] ss:$8 sm:$0x3] }
  0x92   : > { %v607_v11 = vmul.f32 %v602_v6, %v2164_v43  ;;  %v1045_v46 = vrot.slane %v1812_v45, %v2094_v5  ;;  %v1041_v47 = vrot.slane %v1812_v45, %v2092_v4  ;;  %v1313_v59 = vrot.slane %v1819_v57, %v2092_v4 }
  0x93   : > { %612 = vrot.lane.b32.xlu1 %v606_v49, %s2009_s14  ;;  %v1084_v49 = vrot.slane %v1813_v48, %v2094_v5 }
  0x94   : > { %v641_v53 = vpop.permute.xlu1 %640  ;;  %v639_v54 = vpop.permute.xlu0 %638  ;;  %v1872_v20 = vpack.i.bf16 %v608_v10, %v607_v11  ;;  %v1824_v11 = vld [vmem:[%s2599_s9 + $0x6] ss:$8 sm:$0x3] }
  0x95   : > { %v646_v58 = vmul.f32 %v639_v54, %v2162_v42  ;;  %v642_v15 = vsel %vm533_vm7, %v639_v54, %v641_v53  ;;  %v648_v18 = vmul.f32 %v641_v53, %v2183_v3  ;;  %v1119_v53 = vrot.slane %v1814_v51, %v2092_v4  ;;  %v1269_v54 = vld [vmem:[%s2599_s9] ss:$8 sm:$0x3] }
  0x96   : > { %v647_v19 = vmul.f32 %v642_v15, %v2164_v43  ;;  %v1274_v56 = vrot.slane %v1269_v54, %v2092_v4 }
  0x97   : > { %652 = vrot.lane.b32.xlu0 %v646_v58, %s2008_s30  ;;  %1858 = vrot.lane.b32.xlu1 %v1857_v55, %s2012_s26  ;;  %v1278_v55 = vrot.slane %v1269_v54, %v2094_v5  ;;  %v1317_v58 = vrot.slane %v1819_v57, %v2094_v5 }
  0x98   : > { %v679_v61 = vpop.permute.xlu0 %678  ;;  %v681_v62 = vpop.permute.xlu1 %680  ;;  %v1877_v24 = vpack.i.bf16 %v648_v18, %v647_v19 }
  0x99   : > { %v682_v2 = vsel %vm491_vm5, %v679_v61, %v681_v62  ;;  %v686_v7 = vmul.f32 %v679_v61, %v2162_v42  ;;  %v688_v9 = vmul.f32 %v681_v62, %v2183_v3 }
  0x9a   : > { %v687_v8 = vmul.f32 %v682_v2, %v2164_v43  ;;  %v1822_v2 = vld [vmem:[%s2599_s9 + $0x4] ss:$8 sm:$0x3] }
  0x9b   : > { %1868 = vrot.lane.b32.xlu1 %v1867_v1, %s2010_s17  ;;  %1853 = vrot.lane.b32.xlu0 %v1852_v60, %s2013_s27  ;;  %v1820_v60 = vld [vmem:[%s2599_s9 + $0x2] ss:$8 sm:$0x3]  ;;  %v1391_v1 = vrot.slane %v1821_v63, %v2092_v4  ;;  %v1432_v6 = vrot.slane %v1822_v2, %v2092_v4 }
  0x9c   : > { %v721_v13 = vpop.permute.xlu1 %720  ;;  %v719_v14 = vpop.permute.xlu0 %718  ;;  %v1882_v16 = vpack.i.bf16 %v688_v9, %v687_v8  ;;  %v1356_v61 = vrot.slane %v1820_v60, %v2094_v5  ;;  %v1352_v62 = vrot.slane %v1820_v60, %v2092_v4  ;;  %v1823_v8 = vld [vmem:[%s2599_s9 + $0x5] ss:$8 sm:$0x3] }
  0x9d   : > { %v722_v17 = vsel %vm410_vm0, %v719_v14, %v721_v13  ;;  %v728_v21 = vmul.f32 %v721_v13, %v2183_v3  ;;  %v726_v22 = vmul.f32 %v719_v14, %v2162_v42  ;;  %v1471_v9 = vrot.slane %v1823_v8, %v2092_v4  ;;  %v1825_v14 = vld [vmem:[%s2599_s9 + $0x7] ss:$8 sm:$0x3] }
  0x9e   : > { %v727_v23 = vmul.f32 %v722_v17, %v2164_v43  ;;  %v1475_v10 = vrot.slane %v1823_v8, %v2094_v5  ;;  %v1510_v13 = vrot.slane %v1824_v11, %v2092_v4  ;;  %v1553_v15 = vrot.slane %v1825_v14, %v2094_v5 }
  0x9f   : > { %692 = vrot.lane.b32.xlu1 %v686_v7, %s2005_s24  ;;  %1863 = vrot.lane.b32.xlu0 %v1862_v12, %s2011_s22  ;;  %v1436_v7 = vrot.slane %v1822_v2, %v2094_v5  ;;  %v1514_v12 = vrot.slane %v1824_v11, %v2094_v5 }
  0xa0   : > { %v1887_v26 = vpack.i.bf16 %v727_v23, %v726_v22 }
  0xa3   : > { %1883 = vrot.lane.b32.xlu1 %v1882_v16, %s2005_s24  ;;  %1873 = vrot.lane.b32.xlu0 %v1872_v20, %s2009_s14  ;;  %v1549_v16 = vrot.slane %v1825_v14, %v2092_v4  ;;  %v744_v14 = vld [vmem:[%s2592_s2] sm:$0xf] }
  0xa7   : > { %1878 = vrot.lane.b32.xlu0 %v1877_v24, %s2008_s30  ;;  %736 = vrot.lane.b32.xlu1 %v728_v21, %s2006_s25 }
  0xab   : > { %1888 = vrot.lane.b32.xlu0 %v1887_v26, %s2006_s25  ;;  %849 = vrot.lane.b32.xlu1 %v844_v28, %s2006_s25 }
  0xaf   : > { %776 = vperm.xlu0 %1892, %v773_v30   ;;  %851 = vrot.lane.b32.xlu1 %v848_v29, %s2006_s25 }
  0xb3   : > { %890 = vrot.lane.b32.xlu1 %v887_v32, %s2005_s24  ;;  %888 = vrot.lane.b32.xlu0 %v883_v33, %s2005_s24 }
  0xb7   : > { %929 = vrot.lane.b32.xlu1 %v926_v35, %s2008_s30  ;;  %927 = vrot.lane.b32.xlu0 %v922_v36, %s2008_s30 }
  0xbb   : > { %968 = vrot.lane.b32.xlu1 %v965_v38, %s2009_s14  ;;  %966 = vrot.lane.b32.xlu0 %v961_v39, %s2009_s14 }
  0xbf   : > { %1009 = vrot.lane.b32.xlu1 %v1006_v41, %s2010_s17  ;;  %1007 = vrot.lane.b32.xlu0 %v1002_v44, %s2010_s17 }
  0xc3   : > { %1048 = vrot.lane.b32.xlu1 %v1045_v46, %s2011_s22  ;;  %1046 = vrot.lane.b32.xlu0 %v1041_v47, %s2011_s22 }
  0xc7   : > { %1087 = vrot.lane.b32.xlu1 %v1084_v49, %s2012_s26  ;;  %1085 = vrot.lane.b32.xlu0 %v1080_v50, %s2012_s26 }
  0xcb   : > { %1126 = vrot.lane.b32.xlu1 %v1123_v52, %s2013_s27  ;;  %1124 = vrot.lane.b32.xlu0 %v1119_v53, %s2013_s27 }
  0xcf   : > { %1281 = vrot.lane.b32.xlu1 %v1278_v55, %s2006_s25  ;;  %1279 = vrot.lane.b32.xlu0 %v1274_v56, %s2006_s25 }
  0xd3   : > { %1320 = vrot.lane.b32.xlu1 %v1317_v58, %s2005_s24  ;;  %1318 = vrot.lane.b32.xlu0 %v1313_v59, %s2005_s24 }
  0xd7   : > { %1359 = vrot.lane.b32.xlu1 %v1356_v61, %s2008_s30  ;;  %1357 = vrot.lane.b32.xlu0 %v1352_v62, %s2008_s30 }
  0xdb   : > { %1398 = vrot.lane.b32.xlu1 %v1395_v0, %s2009_s14  ;;  %1396 = vrot.lane.b32.xlu0 %v1391_v1, %s2009_s14 }
  0xdf   : > { %1437 = vrot.lane.b32.xlu0 %v1432_v6, %s2010_s17  ;;  %1439 = vrot.lane.b32.xlu1 %v1436_v7, %s2010_s17 }
  0xe3   : > { %1476 = vrot.lane.b32.xlu0 %v1471_v9, %s2011_s22  ;;  %1478 = vrot.lane.b32.xlu1 %v1475_v10, %s2011_s22 }
  0xe7   : > { %1517 = vrot.lane.b32.xlu1 %v1514_v12, %s2012_s26  ;;  %1515 = vrot.lane.b32.xlu0 %v1510_v13, %s2012_s26 }
  0xeb   : > { %1556 = vrot.lane.b32.xlu1 %v1553_v15, %s2013_s27  ;;  %1554 = vrot.lane.b32.xlu0 %v1549_v16, %s2013_s27  ;;  %v2352_v15 = vld [vmem:[%s402_s12] sm:$0xff]  ;;  %v2354_v16 = vld [vmem:[%s402_s12 + $0x8] sm:$0xff] }
  0xf5   : > { %v486_v17 = vpop.permute.xlu1 %485  ;;  %v445_v18 = vpop.permute.xlu0 %444 }
  0xfd   : > { %v528_v20 = vpop.permute.xlu0 %527 }
 0x101   : > { %v570_v19 = vpop.permute.xlu1 %569 }
 0x105   : > { %v613_v21 = vpop.permute.xlu1 %612 }
 0x109   : > { %v653_v22 = vpop.permute.xlu0 %652  ;;  %v1859_v23 = vpop.permute.xlu1 %1858 }
 0x10a   : > { %v1861_v24 = vunpack.i.h.bf16 %v1859_v23  ;;  %v1860_v26 = vunpack.i.l.bf16 %v1859_v23 }
 0x10c   : > { %v493_v5 = vsel %vm491_vm5, %v1860_v26, %v1861_v24  ;;  %v492_v4 = vsel %vm491_vm5, %v486_v17, %v1860_v26  ;;  %v1154_v17 = vpack.c.bf16 %v2354_v16, %v2354_v16 }
 0x10d   : > { %v1869_v27 = vpop.permute.xlu1 %1868  ;;  %v1854_v28 = vpop.permute.xlu0 %1853 }
 0x10e   : > { %v1856_v29 = vunpack.i.h.bf16 %v1854_v28  ;;  %v1855_v30 = vunpack.i.l.bf16 %v1854_v28  ;;  %v1871_v31 = vunpack.i.h.bf16 %v1869_v27  ;;  %v1870_v32 = vunpack.i.l.bf16 %v1869_v27 }
 0x110   : > { %v451_v33 = vsel %vm410_vm0, %v1855_v30, %v1856_v29  ;;  %v450_v34 = vsel %vm410_vm0, %v445_v18, %v1855_v30  ;;  %v577_v44 = vsel %vm575_vm6, %v1870_v32, %v1871_v31  ;;  %v576_v46 = vsel %vm575_vm6, %v570_v19, %v1870_v32 }
 0x111   : > { %v693_v35 = vpop.permute.xlu1 %692  ;;  %v1864_v36 = vpop.permute.xlu0 %1863  ;;  %v764_v37 = vpack.c.bf16 %v493_v5, %v451_v33  ;;  %v763_v38 = vpack.c.bf16 %v492_v4, %v450_v34  ;;  %v1153_v18 = vpack.c.bf16 %v2352_v15, %v2352_v15 }
 0x112   : > { %v1866_v39 = vunpack.i.h.bf16 %v1864_v36  ;;  %v1865_v40 = vunpack.i.l.bf16 %v1864_v36 }
 0x113   : > { %790 = vmatprep.subr.bf16.mxu0 %v764_v37  ;;  %v1160_v19 = vsel %vm783_vm8, %v1153_v18, 0 }
 0x114   : > { %791 = vmatpush1.bf16.msra.mxu0 %v763_v38  ;;  %v535_v41 = vsel %vm533_vm7, %v1865_v40, %v1866_v39  ;;  %v534_v45 = vsel %vm533_vm7, %v528_v20, %v1865_v40  ;;  %v1152_v20 = vld [vmem:[%s2597_s7] sm:$0xf] }
 0x115   : > { %v1884_v47 = vpop.permute.xlu1 %1883  ;;  %v1874_v48 = vpop.permute.xlu0 %1873  ;;  %v766_v49 = vpack.c.bf16 %v577_v44, %v535_v41  ;;  %v765_v50 = vpack.c.bf16 %v576_v46, %v534_v45 }
 0x116   : > { %v1886_v51 = vunpack.i.h.bf16 %v1884_v47  ;;  %v1876_v52 = vunpack.i.h.bf16 %v1874_v48  ;;  %v1875_v53 = vunpack.i.l.bf16 %v1874_v48  ;;  %v1885_v54 = vunpack.i.l.bf16 %v1884_v47 }
 0x117   : > { %792 = vmatprep.subr.bf16.mxu0 %v766_v49 }
 0x118   : > { %793 = vmatpush1.bf16.msra.mxu0 %v765_v50  ;;  %v619_v55 = vsel %vm558_vm3, %v1875_v53, %v1876_v52  ;;  %v618_v56 = vsel %vm558_vm3, %v613_v21, %v1875_v53  ;;  %v699_v62 = vsel %vm474_vm1, %v1885_v54, %v1886_v51  ;;  %v698_v1 = vsel %vm474_vm1, %v693_v35, %v1885_v54 }
 0x119   : > { %v1879_v57 = vpop.permute.xlu0 %1878  ;;  %v768_v58 = vpack.c.bf16 %v619_v55, %v2164_v43  ;;  %v767_v59 = vpack.c.bf16 %v618_v56, %v2162_v42  ;;  %v737_v43 = vpop.permute.xlu1 %736 }
 0x11a   : > { %v1881_v60 = vunpack.i.h.bf16 %v1879_v57  ;;  %v1880_v61 = vunpack.i.l.bf16 %v1879_v57 }
 0x11b   : > { %794 = vmatprep.subr.bf16.mxu0 %v768_v58 }
 0x11c   : > { %795 = vmatpush1.bf16.msra.mxu0 %v767_v59  ;;  %v659_v63 = vsel %vm516_vm4, %v1880_v61, %v1881_v60  ;;  %v658_v0 = vsel %vm516_vm4, %v653_v22, %v1880_v61 }
 0x11d   : > { %v1889_v2 = vpop.permute.xlu0 %1888  ;;  %v770_v6 = vpack.c.bf16 %v699_v62, %v659_v63  ;;  %v769_v7 = vpack.c.bf16 %v698_v1, %v658_v0  ;;  %v2367_v21 = vpop.permute.xlu1 %849 }
 0x11e   : > { %v1891_v8 = vunpack.i.h.bf16 %v1889_v2  ;;  %v1890_v9 = vunpack.i.l.bf16 %v1889_v2 }
 0x11f   : > { %796 = vmatprep.subr.bf16.mxu0 %v770_v6 }
 0x120   : > { %v739_v42 = vsel %vm433_vm2, %v1891_v8, %v737_v43  ;;  %797 = vmatpush1.bf16.msra.mxu0 %v769_v7  ;;  %v738_v10 = vsel %vm433_vm2, %v1890_v9, %v1891_v8 }
 0x121   : > { %v772_v11 = vpack.c.bf16 %v739_v42, %v739_v42  ;;  %v771_v12 = vpack.c.bf16 %v738_v10, %v738_v10  ;;  %v852_v22 = vpop.permute.xlu1 %851 }
 0x122   : > { %v853_v45 = vsel %vm433_vm2, %v2367_v21, %v852_v22 }
 0x123   : > { %1806 = vmatprep.subr.msk.bf16.mxu0 %vm783_vm8, %v772_v11  ;;  %v785_v13 = vsel %vm783_vm8, %v771_v12, 0 }
 0x124   : > { %799 = vmatpush1.bf16.msra.mxu0 %v785_v13 }
 0x125   : > { %1815 = vmatprep.subr.msk.bf16.mxu0 %vm783_vm8, %v1154_v17  ;;  %v891_v24 = vpop.permute.xlu1 %890 }
 0x127   : > { %1807 = vmatmul.mubr.msk.bf16.vlgmr.msra.gmra.mrb[0].mxu0 %vm779_vm9, %v744_v14 }
 0x128   : > { %1197 = vmatprep.mubr.bf16.mxu0 %v2014_v25  ;;  %1166 = vmatpush1.bf16.msra.mxu0 %v1160_v19 }
 0x129   : > { %v930_v27 = vpop.permute.xlu1 %929 }
 0x12d   : > { %v969_v29 = vpop.permute.xlu1 %968 }
 0x12e   : > { %v777_v23 = vpop.permute.xlu0 %776 }
 0x12f   : > { %1816 = vmatmul.mubr.msk.bf16.vlgmr.msra.gmra.mrb[4].mxu0 %vm1155_vm10, %v1152_v20 }
 0x130   : > { %1247 = vmatprep.mubr.bf16.mxu0 %v2014_v25 }
 0x131   : > { %v1010_v5 = vpop.permute.xlu1 %1009 }
 0x132   : > { %v2369_v26 = vpop.permute.xlu0 %888  ;;  %v1017_v11 = vmul.f32 %v1010_v5, %v2183_v3 }
 0x133   : > { %v892_v56 = vsel %vm474_vm1, %v2369_v26, %v891_v24 }
 0x135   : > { %v1049_v31 = vpop.permute.xlu1 %1048 }
 0x136   : > { %v2371_v28 = vpop.permute.xlu0 %927 }
 0x137   : > { %v931_v57 = vsel %vm516_vm4, %v2371_v28, %v930_v27 }
 0x139   : > { %v1088_v33 = vpop.permute.xlu1 %1087 }
 0x13a   : > { %v2373_v30 = vpop.permute.xlu0 %966  ;;  %v1095_v13 = vmul.f32 %v1088_v33, %v2183_v3 }
 0x13b   : > { %v970_v0 = vsel %vm558_vm3, %v2373_v30, %v969_v29 }
 0x13d   : > { %v2375_v25 = vpop.permute.xlu1 %1126 }
 0x13e   : > { %v1008_v4 = vpop.permute.xlu0 %1007 }
 0x13f   : > { %v1011_v1 = vsel %vm575_vm6, %v1008_v4, %v1010_v5  ;;  %v896_v5 = vmul.f32 0.0, %v2369_v26  ;;  %v935_v26 = vmul.f32 0.0, %v2371_v28  ;;  %v1134_v28 = vmul.f32 %v2375_v25, %v2183_v3 }
 0x141   : > { %v2379_v36 = vpop.permute.xlu1 %1281 }
 0x142   : > { %v1047_v32 = vpop.permute.xlu0 %1046 }
 0x143   : > { %v1050_v12 = vsel %vm533_vm7, %v1047_v32, %v1049_v31 }
 0x145   : > { %v2395_v51 = vpop.permute.xlu1 %1320 }
 0x146   : > { %v1086_v34 = vpop.permute.xlu0 %1085 }
 0x147   : > { %v1089_v10 = vsel %vm491_vm5, %v1086_v34, %v1088_v33 }
 0x149   : > { %v2419_v2 = vpop.permute.xlu1 %1359 }
 0x14a   : > { %v2377_v35 = vpop.permute.xlu0 %1124 }
 0x14e   : > { %v2381_v38 = vpop.permute.xlu0 %1279 }
 0x14f   : > { %v1283_v14 = vsel %vm433_vm2, %v2381_v38, %v2379_v36 }
 0x152   : > { %v2397_v52 = vpop.permute.xlu0 %1318 }
 0x153   : > { %v1322_v17 = vsel %vm474_vm1, %v2397_v52, %v2395_v51 }
 0x156   : > { %v2421_v6 = vpop.permute.xlu0 %1357 }
 0x157   : > { %v1361_v33 = vsel %vm516_vm4, %v2421_v6, %v2419_v2 }
 0x1fa   : > { %v824_v37 = vpop.f32.mrb[0].mxu0 }
 0x1fb   : > { %v2383_v39 = vadd.f32 %v824_v37, %v777_v23  ;;  %v826_v40 = vpop.f32.mrb[1].mxu0 }
 0x1fc   : > { %v2385_v41 = vadd.f32 %v826_v40, %v777_v23  ;;  %v828_v44 = vpop.f32.mrb[2].mxu0  ;;  %v1399_v23 = vpop.permute.xlu1 %1398 }
 0x1fd   : > { %v832_v46 = vpack.c.bf16 %v2383_v39, %v2383_v39  ;;  %v829_v47 = vpop.f32.mrb[3].mxu0  ;;  %v1054_v48 = vmul.f32 %v1047_v32, %v2383_v39  ;;  %v1015_v49 = vmul.f32 %v1008_v4, %v2383_v39  ;;  %v858_v53 = vmul.f32 %v853_v45, %v2383_v39 }
 0x1fe   : > { %v833_v50 = vpack.c.bf16 %v2385_v41, %v2385_v41  ;;  %v859_v54 = vmul.f32 %v852_v22, %v2385_v41  ;;  %v1093_v58 = vmul.f32 %v1086_v34, %v2383_v39  ;;  %v897_v60 = vmul.f32 %v892_v56, %v2383_v39 }
 0x1ff   : > { %v1210_v55 = vsel %vm783_vm8, %v832_v46, 0  ;;  %1060 = vrot.lane.b32.xlu0 %v1054_v48, %s2008_s30  ;;  %1021 = vrot.lane.b32.xlu1 %v1015_v49, %s2009_s14  ;;  %v898_v61 = vmul.f32 %v891_v24, %v2385_v41  ;;  %v936_v62 = vmul.f32 %v931_v57, %v2383_v39  ;;  %v937_v63 = vmul.f32 %v930_v27, %v2385_v41  ;;  %v1397_v24 = vpop.permute.xlu0 %1396 }
 0x200   : > { %1817 = vmatprep.subr.msk.bf16.mxu0 %vm783_vm8, %v833_v50  ;;  %v1893_v59 = vpack.i.bf16 %v859_v54, %v858_v53  ;;  %v975_v7 = vmul.f32 %v970_v0, %v2383_v39  ;;  %v976_v43 = vmul.f32 %v969_v29, %v2385_v41  ;;  %v1016_v42 = vmul.f32 %v1011_v1, %v2385_v41 }
 0x201   : > { %1216 = vmatpush1.bf16.msra.mxu0 %v1210_v55  ;;  %v1898_v8 = vpack.i.bf16 %v898_v61, %v897_v60  ;;  %v1903_v9 = vpack.i.bf16 %v937_v63, %v936_v62  ;;  %v1094_v20 = vmul.f32 %v1089_v10, %v2385_v41  ;;  %v1055_v22 = vmul.f32 %v1050_v12, %v2385_v41 }
 0x202   : > { %v1908_v18 = vpack.i.bf16 %v976_v43, %v975_v7  ;;  %v1913_v19 = vpack.i.bf16 %v1017_v11, %v1016_v42  ;;  %v1056_v27 = vmul.f32 %v1049_v31, %v2183_v3  ;;  %v857_v29 = vmul.f32 0.0, %v2367_v21  ;;  %v1440_v21 = vpop.permute.xlu1 %1439 }
 0x203   : > { %1099 = vrot.lane.b32.xlu1 %v1093_v58, %s2005_s24  ;;  %1894 = vrot.lane.b32.xlu0 %v1893_v59, %s2013_s27  ;;  %v1288_v4 = vmul.f32 %v1283_v14, %v2352_v15  ;;  %v1327_v32 = vmul.f32 %v1322_v17, %v2352_v15  ;;  %v1400_v34 = vsel %vm558_vm3, %v1397_v24, %v1399_v23  ;;  %v1438_v40 = vpop.permute.xlu0 %1437  ;;  %v974_v44 = vmul.f32 0.0, %v2373_v30 }
 0x204   : > { %v1923_v37 = vpack.i.bf16 %v1095_v13, %v1094_v20  ;;  %v1918_v31 = vpack.i.bf16 %v1056_v27, %v1055_v22  ;;  %v1366_v45 = vmul.f32 %v1361_v33, %v2352_v15  ;;  %v1405_v46 = vmul.f32 %v1400_v34, %v2352_v15  ;;  %v2506_v27 = vld [vmem:[%s2594_s4] sm:$0xff] }
 0x205   : > { %v1933_v47 = vpack.i.bf16 %v1327_v32, %v896_v5  ;;  %v1928_v48 = vpack.i.bf16 %v1288_v4, %v857_v29  ;;  %v1128_v49 = vsel %vm410_vm0, %v2377_v35, %v2375_v25  ;;  %v1289_v30 = vmul.f32 %v2379_v36, %v2354_v16  ;;  %v1635_v32 = vld [vmem:[%s2595_s5] sm:$0xff] }
 0x206   : > { %v1948_v50 = vpack.i.bf16 %v1405_v46, %v974_v44  ;;  %v1938_v53 = vpack.i.bf16 %v1366_v45, %v935_v26  ;;  %v1287_v54 = vmul.f32 0.0, %v2381_v38  ;;  %v1133_v55 = vmul.f32 %v1128_v49, %v2385_v41  ;;  %v1479_v57 = vpop.permute.xlu1 %1478  ;;  %v831_v33 = vld [vmem:[%s2596_s6] sm:$0xf] }
 0x207   : > { %1899 = vrot.lane.b32.xlu1 %v1898_v8, %s2012_s26  ;;  %1904 = vrot.lane.b32.xlu0 %v1903_v9, %s2011_s22  ;;  %v1477_v56 = vpop.permute.xlu0 %1476  ;;  %v1328_v59 = vmul.f32 %v2395_v51, %v2354_v16  ;;  %v1326_v60 = vmul.f32 0.0, %v2397_v52  ;;  %v1132_v61 = vmul.f32 %v2377_v35, %v2383_v39  ;;  %v1367_v63 = vmul.f32 %v2419_v2, %v2354_v16 }
 0x208   : > { %v1953_v58 = vpack.i.bf16 %v1287_v54, %v1289_v30  ;;  %v1943_v25 = vpack.i.bf16 %v1134_v28, %v1133_v55  ;;  %v1365_v0 = vmul.f32 0.0, %v2421_v6  ;;  %v1484_v51 = vmul.f32 %v1477_v56, %v2352_v15  ;;  %1818 = vmatmul.mubr.msk.bf16.vlgmr.msra.gmra.mrb[8].mxu0 %vm1155_vm10, %v831_v33 }
 0x209   : > { %v1958_v62 = vpack.i.bf16 %v1326_v60, %v1328_v59  ;;  %v1406_v52 = vmul.f32 %v1399_v23, %v2354_v16  ;;  %v1404_v1 = vmul.f32 0.0, %v1397_v24  ;;  %v1441_v35 = vsel %vm575_vm6, %v1438_v40, %v1440_v21 }
 0x20a   : > { %v1518_v36 = vpop.permute.xlu1 %1517  ;;  %v1963_v7 = vpack.i.bf16 %v1365_v0, %v1367_v63  ;;  %v1480_v43 = vsel %vm533_vm7, %v1477_v56, %v1479_v57  ;;  %v1445_v6 = vmul.f32 %v1438_v40, %v2352_v15  ;;  %v1446_v10 = vmul.f32 %v1441_v35, %v2354_v16 }
 0x20b   : > { %1909 = vrot.lane.b32.xlu1 %v1908_v18, %s2010_s17  ;;  %1914 = vrot.lane.b32.xlu0 %v1913_v19, %s2009_s14  ;;  %v1516_v38 = vpop.permute.xlu0 %1515  ;;  %v1968_v2 = vpack.i.bf16 %v1404_v1, %v1406_v52  ;;  %v1447_v11 = vmul.f32 %v1440_v21, %v2183_v3  ;;  %v1485_v12 = vmul.f32 %v1480_v43, %v2354_v16 }
 0x20c   : > { %v1486_v13 = vmul.f32 %v1479_v57, %v2183_v3  ;;  %v1519_v14 = vsel %vm491_vm5, %v1516_v38, %v1518_v36  ;;  %v1525_v22 = vmul.f32 %v1518_v36, %v2183_v3  ;;  %v1827_v29 = vcombine.high %v2506_v27, %v2506_v27 }
 0x20d   : > { %v1973_v19 = vpack.i.bf16 %v1447_v11, %v1446_v10  ;;  %v1524_v23 = vmul.f32 %v1519_v14, %v2354_v16 }
 0x20e   : > { %v1557_v8 = vpop.permute.xlu1 %1556  ;;  %v1978_v20 = vpack.i.bf16 %v1486_v13, %v1485_v12  ;;  %1828 = vmatprep.mubr.msk.bf16.mxu1 %vm491_vm5, %v1827_v29 }
 0x20f   : > { %1924 = vrot.lane.b32.xlu1 %v1923_v37, %s2005_s24  ;;  %1919 = vrot.lane.b32.xlu0 %v1918_v31, %s2008_s30  ;;  %v1555_v9 = vpop.permute.xlu0 %1554  ;;  %v1564_v17 = vmul.f32 %v1557_v8, %v2183_v3  ;;  %v1983_v5 = vpack.i.bf16 %v1525_v22, %v1524_v23  ;;  %v1523_v3 = vmul.f32 %v1516_v38, %v2352_v15 }
 0x210   : > { %v1558_v42 = vsel %vm410_vm0, %v1555_v9, %v1557_v8  ;;  %v1562_v4 = vmul.f32 %v1555_v9, %v2352_v15 }
 0x211   : > { %v1563_v18 = vmul.f32 %v1558_v42, %v2354_v16 }
 0x213   : > { %1934 = vrot.lane.b32.xlu1 %v1933_v47, %s2012_s26  ;;  %1929 = vrot.lane.b32.xlu0 %v1928_v48, %s2013_s27  ;;  %v1988_v24 = vpack.i.bf16 %v1564_v17, %v1563_v18 }
 0x217   : > { %1949 = vrot.lane.b32.xlu1 %v1948_v50, %s2010_s17  ;;  %1939 = vrot.lane.b32.xlu0 %v1938_v53, %s2011_s22 }
 0x21b   : > { %1954 = vrot.lane.b32.xlu1 %v1953_v58, %s2013_s27  ;;  %1944 = vrot.lane.b32.xlu0 %v1943_v25, %s2006_s25 }
 0x21f   : > { %1959 = vrot.lane.b32.xlu1 %v1958_v62, %s2012_s26  ;;  %1138 = vrot.lane.b32.xlu0 %v1132_v61, %s2006_s25 }
 0x223   : > { %1490 = vrot.lane.b32.xlu1 %v1484_v51, %s2008_s30  ;;  %1964 = vrot.lane.b32.xlu0 %v1963_v7, %s2011_s22 }
 0x227   : > { %1969 = vrot.lane.b32.xlu1 %v1968_v2, %s2010_s17  ;;  %1451 = vrot.lane.b32.xlu0 %v1445_v6, %s2009_s14 }
 0x22b   : > { %1979 = vrot.lane.b32.xlu1 %v1978_v20, %s2008_s30  ;;  %1974 = vrot.lane.b32.xlu0 %v1973_v19, %s2009_s14 }
 0x22f   : > { %1989 = vrot.lane.b32.xlu1 %v1988_v24, %s2006_s25  ;;  %1984 = vrot.lane.b32.xlu0 %v1983_v5, %s2005_s24 }
 0x233   : > { %1568 = vrot.lane.b32.xlu1 %v1562_v4, %s2006_s25  ;;  %1529 = vrot.lane.b32.xlu0 %v1523_v3, %s2005_s24 }
 0x237   : > { %1638 = vperm.xlu0 %1892, %v1635_v32  }
 0x271   : > { %v2524_v34 = vpop.permute.xlu0 %1060  ;;  %v1022_v37 = vpop.permute.xlu1 %1021 }
 0x275   : > { %v2526_v31 = vpop.permute.xlu1 %1099  ;;  %v1895_v40 = vpop.permute.xlu0 %1894 }
 0x276   : > { %v1897_v21 = vunpack.i.h.bf16 %v1895_v40  ;;  %v1896_v26 = vunpack.i.l.bf16 %v1895_v40 }
 0x278   : > { %v870_v48 = vsel %vm410_vm0, %v1896_v26, %v1897_v21 }
 0x279   : > { %v1900_v44 = vpop.permute.xlu1 %1899  ;;  %v1905_v45 = vpop.permute.xlu0 %1904 }
 0x27a   : > { %v1902_v46 = vunpack.i.h.bf16 %v1900_v44  ;;  %v1901_v47 = vunpack.i.l.bf16 %v1900_v44  ;;  %v1907_v57 = vunpack.i.h.bf16 %v1905_v45  ;;  %v1906_v58 = vunpack.i.l.bf16 %v1905_v45 }
 0x27c   : > { %v909_v49 = vsel %vm491_vm5, %v1901_v47, %v1902_v46  ;;  %v948_v51 = vsel %vm533_vm7, %v1906_v58, %v1907_v57 }
 0x27d   : > { %v1910_v50 = vpop.permute.xlu1 %1909  ;;  %v1915_v53 = vpop.permute.xlu0 %1914  ;;  %v1618_v28 = vpack.c.bf16 %v909_v49, %v870_v48 }
 0x27e   : > { %v1912_v55 = vunpack.i.h.bf16 %v1910_v50  ;;  %v1911_v56 = vunpack.i.l.bf16 %v1910_v50  ;;  %v1917_v61 = vunpack.i.h.bf16 %v1915_v53  ;;  %v1916_v62 = vunpack.i.l.bf16 %v1915_v53 }
 0x27f   : > { %1650 = vmatprep.subr.bf16.mxu1 %v1618_v28 }
 0x280   : > { %v987_v38 = vsel %vm575_vm6, %v1911_v56, %v1912_v55  ;;  %v1028_v10 = vsel %vm558_vm3, %v1916_v62, %v1917_v61  ;;  %v1027_v19 = vsel %vm558_vm3, %v1022_v37, %v1916_v62 }
 0x281   : > { %v1925_v30 = vpop.permute.xlu1 %1924  ;;  %v1920_v54 = vpop.permute.xlu0 %1919  ;;  %v1620_v8 = vpack.c.bf16 %v987_v38, %v948_v51  ;;  %v1622_v18 = vpack.c.bf16 %v1028_v10, %v2385_v41  ;;  %v1621_v32 = vpack.c.bf16 %v1027_v19, %v2383_v39 }
 0x282   : > { %v1922_v9 = vunpack.i.h.bf16 %v1920_v54  ;;  %v1921_v35 = vunpack.i.l.bf16 %v1920_v54  ;;  %v1927_v6 = vunpack.i.h.bf16 %v1925_v30  ;;  %v1926_v42 = vunpack.i.l.bf16 %v1925_v30 }
 0x284   : > { %v1067_v20 = vsel %vm516_vm4, %v1921_v35, %v1922_v9  ;;  %v1106_v29 = vsel %vm474_vm1, %v1926_v42, %v1927_v6  ;;  %v1066_v41 = vsel %vm516_vm4, %v2524_v34, %v1921_v35  ;;  %v1105_v37 = vsel %vm474_vm1, %v2526_v31, %v1926_v42 }
 0x285   : > { %v2530_v59 = vpop.permute.xlu1 %1934  ;;  %v1930_v60 = vpop.permute.xlu0 %1929  ;;  %v1624_v33 = vpack.c.bf16 %v1106_v29, %v1067_v20  ;;  %v1623_v48 = vpack.c.bf16 %v1105_v37, %v1066_v41 }
 0x286   : > { %v1936_v25 = vunpack.i.l.bf16 %v2530_v59  ;;  %v1931_v36 = vunpack.i.l.bf16 %v1930_v60  ;;  %v1932_v5 = vunpack.i.h.bf16 %v1930_v60  ;;  %v1937_v45 = vunpack.i.h.bf16 %v2530_v59 }
 0x288   : > { %v869_v63 = vsel %vm410_vm0, %v1931_v36, %v1896_v26  ;;  %v908_v0 = vsel %vm491_vm5, %v1936_v25, %v1901_v47 }
 0x289   : > { %v2537_v52 = vpop.permute.xlu1 %1949  ;;  %v2539_v1 = vpop.permute.xlu0 %1939  ;;  %v1617_v7 = vpack.c.bf16 %v908_v0, %v869_v63 }
 0x28a   : > { %v1951_v43 = vunpack.i.l.bf16 %v2537_v52  ;;  %v1941_v2 = vunpack.i.l.bf16 %v2539_v1  ;;  %v1942_v46 = vunpack.i.h.bf16 %v2539_v1  ;;  %v1952_v59 = vunpack.i.h.bf16 %v2537_v52 }
 0x28b   : > { %1651 = vmatpush1.bf16.msra.mxu1 %v1617_v7 }
 0x28c   : > { %1652 = vmatprep.subr.bf16.mxu1 %v1620_v8  ;;  %v947_v11 = vsel %vm533_vm7, %v1941_v2, %v1906_v58  ;;  %v986_v12 = vsel %vm575_vm6, %v1951_v43, %v1911_v56 }
 0x28d   : > { %v1955_v13 = vpop.permute.xlu1 %1954  ;;  %v1945_v14 = vpop.permute.xlu0 %1944  ;;  %v1619_v17 = vpack.c.bf16 %v986_v12, %v947_v11 }
 0x28e   : > { %v1956_v22 = vunpack.i.l.bf16 %v1955_v13  ;;  %v1947_v23 = vunpack.i.h.bf16 %v1945_v14  ;;  %v1946_v24 = vunpack.i.l.bf16 %v1945_v14  ;;  %v1957_v26 = vunpack.i.h.bf16 %v1955_v13 }
 0x28f   : > { %1653 = vmatpush1.bf16.msra.mxu1 %v1619_v17 }
 0x290   : > { %1654 = vmatprep.subr.bf16.mxu1 %v1622_v18  ;;  %v1145_v40 = vsel %vm433_vm2, %v1946_v24, %v1947_v23  ;;  %v1300_v21 = vsel %vm410_vm0, %v1932_v5, %v1956_v22  ;;  %v1299_v28 = vsel %vm410_vm0, %v1957_v26, %v1932_v5 }
 0x291   : > { %v1960_v3 = vpop.permute.xlu1 %1959  ;;  %v1139_v4 = vpop.permute.xlu0 %1138  ;;  %v1626_v31 = vpack.c.bf16 %v1300_v21, %v1145_v40 }
 0x292   : > { %v1961_v44 = vunpack.i.l.bf16 %v1960_v3  ;;  %v1144_v34 = vsel %vm433_vm2, %v1139_v4, %v1946_v24  ;;  %v1962_v53 = vunpack.i.h.bf16 %v1960_v3  ;;  %v1826_v3 = vcombine.low %v2506_v27, %v2506_v27  ;;  %v1256_v27 = vld [vmem:[%s2598_s8] sm:$0xff] }
 0x293   : > { %1655 = vmatpush1.bf16.msra.mxu1 %v1621_v32  ;;  %v1625_v55 = vpack.c.bf16 %v1299_v28, %v1144_v34 }
 0x294   : > { %1656 = vmatprep.subr.bf16.mxu1 %v1624_v33  ;;  %v1339_v30 = vsel %vm491_vm5, %v1937_v45, %v1961_v44  ;;  %v1338_v38 = vsel %vm491_vm5, %v1962_v53, %v1937_v45 }
 0x295   : > { %v1491_v39 = vpop.permute.xlu1 %1490  ;;  %v1965_v47 = vpop.permute.xlu0 %1964 }
 0x296   : > { %v1967_v49 = vunpack.i.h.bf16 %v1965_v47  ;;  %v1966_v50 = vunpack.i.l.bf16 %v1965_v47 }
 0x297   : > { %1657 = vmatpush1.bf16.msra.mxu1 %v1623_v48 }
 0x298   : > { %1658 = vmatprep.subr.bf16.mxu1 %v1626_v31  ;;  %v1378_v54 = vsel %vm533_vm7, %v1942_v46, %v1966_v50  ;;  %v1377_v36 = vsel %vm533_vm7, %v1967_v49, %v1942_v46 }
 0x299   : > { %v1970_v56 = vpop.permute.xlu1 %1969  ;;  %v1452_v57 = vpop.permute.xlu0 %1451  ;;  %v1628_v58 = vpack.c.bf16 %v1378_v54, %v1339_v30  ;;  %v1627_v0 = vpack.c.bf16 %v1377_v36, %v1338_v38 }
 0x29a   : > { %v1972_v60 = vunpack.i.h.bf16 %v1970_v56  ;;  %v1971_v25 = vunpack.i.l.bf16 %v1970_v56 }
 0x29b   : > { %1659 = vmatpush1.bf16.msra.mxu1 %v1625_v55 }
 0x29c   : > { %1660 = vmatprep.subr.bf16.mxu1 %v1628_v58  ;;  %v1417_v61 = vsel %vm575_vm6, %v1952_v59, %v1971_v25  ;;  %v1416_v1 = vsel %vm575_vm6, %v1972_v60, %v1952_v59 }
 0x29d   : > { %v1980_v62 = vpop.permute.xlu1 %1979  ;;  %v1975_v63 = vpop.permute.xlu0 %1974  ;;  %v1630_v51 = vpack.c.bf16 %v2354_v16, %v1417_v61  ;;  %v1629_v42 = vpack.c.bf16 %v2352_v15, %v1416_v1  ;;  %v1712_v61 = vstv %s1709_s15 }
 0x29e   : > { %v1982_v7 = vunpack.i.h.bf16 %v1980_v62  ;;  %v1981_v8 = vunpack.i.l.bf16 %v1980_v62  ;;  %v1977_v52 = vunpack.i.h.bf16 %v1975_v63  ;;  %v1976_v9 = vunpack.i.l.bf16 %v1975_v63 }
 0x29f   : > { %1661 = vmatpush1.bf16.msra.mxu1 %v1627_v0 }
 0x2a0   : > { %1662 = vmatprep.subr.bf16.mxu1 %v1630_v51  ;;  %v1458_v35 = vsel %vm558_vm3, %v1976_v9, %v1977_v52  ;;  %v1497_v43 = vsel %vm516_vm4, %v1981_v8, %v1982_v7  ;;  %v1457_v11 = vsel %vm558_vm3, %v1452_v57, %v1976_v9  ;;  %v1496_v16 = vsel %vm516_vm4, %v1491_v39, %v1981_v8  ;;  %v1199_v39 = vpop.f32.mrb[4].mxu0 }
 0x2a1   : > { %v1990_v2 = vpop.permute.xlu1 %1989  ;;  %v1985_v6 = vpop.permute.xlu0 %1984  ;;  %v1632_v10 = vpack.c.bf16 %v1497_v43, %v1458_v35  ;;  %v1631_v23 = vpack.c.bf16 %v1496_v16, %v1457_v11 }
 0x2a2   : > { %v1992_v12 = vunpack.i.h.bf16 %v1990_v2  ;;  %v1991_v13 = vunpack.i.l.bf16 %v1990_v2  ;;  %v1987_v14 = vunpack.i.h.bf16 %v1985_v6  ;;  %v1986_v17 = vunpack.i.l.bf16 %v1985_v6  ;;  %v1201_v47 = vpop.f32.mrb[5].mxu0 }
 0x2a3   : > { %1663 = vmatpush1.bf16.msra.mxu1 %v1629_v42  ;;  %v1203_v48 = vpop.f32.mrb[6].mxu0 }
 0x2a4   : > { %1664 = vmatprep.subr.bf16.mxu1 %v1632_v10  ;;  %v1536_v18 = vsel %vm474_vm1, %v1986_v17, %v1987_v14  ;;  %v1575_v19 = vsel %vm433_vm2, %v1991_v13, %v1992_v12  ;;  %v1204_v34 = vpop.f32.mrb[7].mxu0 }
 0x2a5   : > { %v1569_v20 = vpop.permute.xlu1 %1568  ;;  %v1530_v22 = vpop.permute.xlu0 %1529  ;;  %v1634_v24 = vpack.c.bf16 %v1575_v19, %v1536_v18 }
 0x2a6   : > { %v1574_v15 = vsel %vm433_vm2, %v1569_v20, %v1991_v13  ;;  %v1535_v29 = vsel %vm474_vm1, %v1530_v22, %v1986_v17 }
 0x2a7   : > { %1665 = vmatpush1.bf16.msra.mxu1 %v1631_v23  ;;  %v1633_v5 = vpack.c.bf16 %v1574_v15, %v1535_v29 }
 0x2a8   : > { %1666 = vmatprep.subr.bf16.mxu1 %v1634_v24 }
 0x2ab   : > { %1667 = vmatpush1.bf16.msra.mxu1 %v1633_v5 }
 0x2ae   : > { %1683 = vmatmul.mubr.bf16.vlgmr.msra.gmra.mrb[0].mxu1 %v1826_v3 }
 0x2b6   : > { %v1639_v4 = vpop.permute.xlu0 %1638 }
 0x2db   : > { %v1249_v49 = vpop.f32.mrb[8].mxu0 }
 0x2dc   : > { %v1250_v50 = vadd.f32 %v1249_v49, %v1199_v39  ;;  %v1251_v31 = vpop.f32.mrb[9].mxu0 }
 0x2dd   : > { %v1252_v53 = vadd.f32 %v1251_v31, %v1201_v47  ;;  %v1253_v28 = vpop.f32.mrb[10].mxu0 }
 0x2de   : > { %v1254_v30 = vpop.f32.mrb[11].mxu0 }
 0x381   : > { %v1684_v32 = vpop.f32.mrb[0].mxu1 }
 0x382   : > { %v1685_v33 = vadd.f32 %v1684_v32, %v1639_v4  ;;  %v1686_v41 = vpop.f32.mrb[1].mxu1 }
 0x383   : > { %v1687_v37 = vadd.f32 %v1686_v41, %v1639_v4  ;;  %v1688_v40 = vpop.f32.mrb[2].mxu1 }
 0x384   : > { %v1689_v21 = vpop.f32.mrb[3].mxu1  ;;  %v1694_v26 = vmul.f32 %v1685_v33, %v1685_v33 }
 0x385   : > { %v1691_v44 = vadd.f32 %v1687_v37, %v1685_v33  ;;  %v1695_v45 = vmul.f32 %v1687_v37, %v1687_v37 }
 0x387   : > { %1692 = vadd.xlane.f32.xlu1 %v1691_v44  ;;  %v1696_v46 = vadd.f32 %v1695_v45, %v1694_v26 }
 0x389   : > { %1697 = vadd.xlane.f32.xlu0 %v1696_v46 }
 0x39f   : > { %1259 = vperm.xlu0 %1892, %v1256_v27  }
 0x414   : > { %v1693_v54 = vpop.xlane.xlu1 %1692 }
 0x415   : > { %v1699_v55 = vmul.f32 0.00390625, %v1693_v54 }
 0x416   : > { %v1698_v56 = vpop.xlane.xlu0 %1697 }
 0x417   : > { %v1701_v57 = vmul.f32 %v1699_v55, %v1699_v55  ;;  %v1700_v58 = vmul.f32 0.00390625, %v1698_v56  ;;  %v1703_v25 = vsub.f32 %v1685_v33, %v1699_v55  ;;  %v1704_v36 = vsub.f32 %v1687_v37, %v1699_v55 }
 0x419   : > { %v1702_v59 = vsub.f32 %v1700_v58, %v1701_v57 }
 0x41b   : > { %v1705_v60 = vadd.f32 1e-05, %v1702_v59 }
 0x41d   : > { %1995 = vrsqrt.f32 %v1705_v60 }
 0x41e   : > { %v1260_v62 = vpop.permute.xlu0 %1259 }
 0x41f   : > { %v1262_v7 = vadd.f32 %v1260_v62, %v1250_v50  ;;  %v1263_v8 = vadd.f32 %v1260_v62, %v1252_v53 }
 0x427   : > { %v1996_v38 = vpop.eup %1995 }
 0x428   : > { %v1707_v63 = vmul.f32 %v1996_v38, %v1703_v25  ;;  %v1708_v0 = vmul.f32 %v1996_v38, %v1704_v36 }
 0x42a   : > { %vm1710_vm11 = vcmp.ge.f32.partialorder %v1707_v63, 0.0  ;;  %vm1711_vm12 = vcmp.ge.f32.partialorder %v1708_v0, 0.0  ;;  %v1713_v51 = vmul.f32 %v1712_v61, %v1707_v63  ;;  %v1714_v1 = vmul.f32 %v1712_v61, %v1708_v0 }
 0x42c   : > { %v1715_v52 = vsel %vm1710_vm11, %v1707_v63, %v1713_v51  ;;  %v1716_v9 = vsel %vm1711_vm12, %v1708_v0, %v1714_v1 }
 0x42d   : > { %v1717_v35 = vadd.f32 %v1715_v52, %v1262_v7  ;;  %v1718_v43 = vadd.f32 %v1716_v9, %v1263_v8 }
 0x42f   : > { %1719 = vst [vmem:[%s407_s21] sm:$0xff] %v1717_v35  ;;  %1720 = vst [vmem:[%s407_s21 + $0x8] sm:$0xff] %v1718_v43 }
 0x430 PF: > { %s22_s19 = sadd.s32 1, %s2003_s19  }
 0x431   : > { %p19_p4 = scmp.ge.s32.totalorder %s22_s19, 4  }
 0x433   :  { %21 = sbr.rel (!%p19_p4) target bundleno = 2 (0x2), region = 104 }

</bundles_post_ra>
